<compile_context>
chip_gen: v7x
topology: tpu7x:2x2x1
jax: 0.10.0
libtpu: 0.0.40
codegen_flags: <defaults>
</compile_context>

<pallas_src>
import jax
import jax.numpy as jnp
import numpy as np
from jax.experimental import pallas as pl
from jax.experimental.pallas import tpu as pltpu

BN_EPS = 1e-5
LRELU_SLOPE = 0.2

# (kernel, stride, pad) for the 5 Conv2d layers of ConvEncoder.
_LAYER_CFG = ((4, 2, 1), (4, 2, 1), (4, 2, 1), (2, 1, 0), (1, 1, 0))


# ----------------------------- Pallas kernel ------------------------------ #
def _fused_encoder_kernel(x_ref, w1_ref, w2_ref, w3_ref, w4_ref, w5_ref,
                          g2_ref, g2t_ref, g3_ref, g3t_ref, o_ref):
    n = x_ref.shape[0]

    def mxu(act, w_ref):
        # bf16 operands, f32 accumulation on the MXU.
        return jnp.dot(act.astype(jnp.bfloat16), w_ref[...],
                       preferred_element_type=jnp.float32)

    def lrelu(y):
        # slope in (0,1)  =>  max(y, slope*y) == LeakyReLU(y)
        return jnp.maximum(y, LRELU_SLOPE * y)

    def batchnorm(y, g_ref, gt_ref):
        # y: (N, P*CO) f32, columns ordered (position-major, channel-minor).
        # One-pass batch stats (sum / sum-of-squares) over the N rows and P
        # position groups; per-channel gather with constant 0/1 matrix G
        # (D, CO), broadcast back with G^T.  gamma=1, beta=0 at init.
        co = g_ref.shape[1]
        count = n * (g_ref.shape[0] // co)
        s1 = jnp.sum(y, axis=0, keepdims=True)           # (1, D)
        s2 = jnp.sum(y * y, axis=0, keepdims=True)        # (1, D)
        ch_s1 = jnp.dot(s1, g_ref[...], preferred_element_type=jnp.float32)
        ch_s2 = jnp.dot(s2, g_ref[...], preferred_element_type=jnp.float32)
        mean = ch_s1 / count                               # (1, CO)
        var = jnp.maximum(ch_s2 / count - mean * mean, 0.0)
        inv = jax.lax.rsqrt(var + BN_EPS)
        mean_cols = jnp.dot(mean, gt_ref[...], preferred_element_type=jnp.float32)
        inv_cols = jnp.dot(inv, gt_ref[...], preferred_element_type=jnp.float32)
        return (y - mean_cols) * inv_cols

    # conv1 + LeakyReLU                                    (N, 8*8*ndf)
    y = lrelu(mxu(x_ref[...], w1_ref))
    # conv2 + BN + LeakyReLU                               (N, 4*4*2ndf)
    y = lrelu(batchnorm(mxu(y, w2_ref), g2_ref, g2t_ref))
    # conv3 + BN + LeakyReLU                               (N, 2*2*4ndf)
    y = lrelu(batchnorm(mxu(y, w3_ref), g3_ref, g3t_ref))
    # conv4 + BN + LeakyReLU (single spatial position -> stats over batch only)
    y = mxu(y, w4_ref)                                     # (N, 4ndf)
    mean = jnp.mean(y, axis=0, keepdims=True)
    var = jnp.maximum(jnp.mean(y * y, axis=0, keepdims=True) - mean * mean, 0.0)
    y = lrelu((y - mean) * jax.lax.rsqrt(var + BN_EPS))
    # conv5 (1x1) -> (N, 1)
    o_ref[...] = mxu(y, w5_ref)


# ------------------------------ JAX wrapper -------------------------------- #
def conv_encoder_forward(x_nchw, prepared):
    """x_nchw: (N, C, H, W) float32, exactly as the PyTorch module receives."""
    w1, w2, w3, w4, w5, g2, g2t, g3, g3t = prepared
    n = x_nchw.shape[0]
    # w1's rows are in NCHW-flat order, so a (metadata-only) reshape is the
    # only glue; the bf16 cast happens inside the kernel (saves an XLA op and
    # one HBM round-trip of the input).
    x2d = x_nchw.reshape(n, -1)
    args = (x2d, w1, w2, w3, w4, w5, g2, g2t, g3, g3t)
    out = pl.pallas_call(
        _fused_encoder_kernel,
        out_shape=jax.ShapeDtypeStruct((n, 1), jnp.float32),
        grid=(1,),
        in_specs=[pl.BlockSpec(a.shape, lambda i: (0, 0)) for a in args],
        out_specs=pl.BlockSpec((n, 1), lambda i: (0, 0)),
        compiler_params=pltpu.CompilerParams(
            dimension_semantics=("arbitrary",)),
    )(*args)
    return out.reshape(-1)   # == .view(-1, 1).squeeze(1)


# ----------------------- host-side (one-time) lowering --------------------- #
def _lower_conv_weight(w, ih, iw, stride, pad, nchw_rows):
    """Lower a (CO, CI, KH, KW) Conv2d weight to a dense
    (IH*IW*CI, OH*OW*CO) matrix so that  y_flat = x_flat @ W_big  equals the
    conv with zero padding.  Row order is NCHW-flat for the first layer and
    (position-major, channel-minor) otherwise (matching the column order of
    the previous layer's output)."""
    co, ci, kh_sz, kw_sz = w.shape
    oh = (ih + 2 * pad - kh_sz) // stride + 1
    ow = (iw + 2 * pad - kw_sz) // stride + 1
    wbig = np.zeros((ih * iw * ci, oh * ow * co), dtype=np.float32)
    wnp = np.asarray(w, dtype=np.float32)
    for oy in range(oh):
        for ox in range(ow):
            col = (oy * ow + ox) * co
            for kh in range(kh_sz):
                iy = oy * stride + kh - pad
                if iy < 0 or iy >= ih:
                    continue
                for kw in range(kw_sz):
                    ix = ox * stride + kw - pad
                    if ix < 0 or ix >= iw:
                        continue
                    for c in range(ci):
                        if nchw_rows:
                            r = c * ih * iw + iy * iw + ix
                        else:
                            r = (iy * iw + ix) * ci + c
                        wbig[r, col:col + co] = wnp[:, c, kh, kw]
    return wbig, oh, ow


def prepare_params(weights, image_hw):
    """One-time host-side lowering (hoisted out of the per-forward path):
    bf16 lowered-conv matrices + f32 BN channel-grouping matrices."""
    ih = iw = image_hw
    lowered, out_dims = [], []
    for li, (w, (_, s, p)) in enumerate(zip(weights, _LAYER_CFG)):
        wbig, oh, ow = _lower_conv_weight(np.asarray(w), ih, iw, s, p,
                                          nchw_rows=(li == 0))
        lowered.append(jnp.asarray(wbig, dtype=jnp.bfloat16))
        out_dims.append((oh, ow, int(w.shape[0])))
        ih, iw = oh, ow

    def gmat(oh, ow, co):
        g = np.tile(np.eye(co, dtype=np.float32), (oh * ow, 1))
        return jnp.asarray(g), jnp.asarray(np.ascontiguousarray(g.T))

    g2, g2t = gmat(*out_dims[1])   # BN after conv2
    g3, g3t = gmat(*out_dims[2])   # BN after conv3
    return tuple(lowered) + (g2, g2t, g3, g3t)


def make_params(key, in_channels, out_channels):
    # Deterministic synthetic weights, exact shapes from ConvEncoder.__init__.
    nc, ndf = in_channels, out_channels
    shapes = [
        (ndf, nc, 4, 4),           # Conv2d(nc, ndf, 4, 2, 1)
        (ndf * 2, ndf, 4, 4),      # Conv2d(ndf, ndf*2, 4, 2, 1)
        (ndf * 4, ndf * 2, 4, 4),  # Conv2d(ndf*2, ndf*4, 4, 2, 1)
        (ndf * 4, ndf * 4, 2, 2),  # Conv2d(ndf*4, ndf*4, 2, 1, 0)
        (1, ndf * 4, 1, 1),        # Conv2d(ndf*4, 1, 1, 1, 0)
    ]
    keys = jax.random.split(key, len(shapes))
    return [0.05 * jax.random.normal(k, s, dtype=jnp.float32)
            for k, s in zip(keys, shapes)]


if __name__ == "__main__":
    key = jax.random.PRNGKey(0)
    kx, kw = jax.random.split(key)
    in_channels, out_channels = 4, 8
    # 16x16 input -> 8 -> 4 -> 2 -> 1 -> 1 spatial, matching the conv stack.
    x = jax.random.normal(kx, (2, in_channels, 16, 16), dtype=jnp.float32)
    weights = make_params(kw, in_channels, out_channels)
    prepared = prepare_params(weights, image_hw=16)   # hoisted: done once

    fwd = jax.jit(conv_encoder_forward)
    out = fwd(x, prepared)
    jax.block_until_ready(out)
    assert out.shape == (2,) and out.dtype == jnp.float32
    assert bool(jnp.all(jnp.isfinite(out)))
    print("KERNEL_OK")
</pallas_src>

<mosaic_0001>
module attributes {stable_mosaic.version = 11 : i64} {
  func.func @_fused_encoder_kernel(%arg0: i32, %arg1: memref<2x1024xf32, #tpu.memory_space<vmem>>, %arg2: memref<1024x512xbf16, #tpu.memory_space<vmem>>, %arg3: memref<512x256xbf16, #tpu.memory_space<vmem>>, %arg4: memref<256x128xbf16, #tpu.memory_space<vmem>>, %arg5: memref<128x32xbf16, #tpu.memory_space<vmem>>, %arg6: memref<32x1xbf16, #tpu.memory_space<vmem>>, %arg7: memref<256x16xf32, #tpu.memory_space<vmem>>, %arg8: memref<16x256xf32, #tpu.memory_space<vmem>>, %arg9: memref<128x32xf32, #tpu.memory_space<vmem>>, %arg10: memref<32x128xf32, #tpu.memory_space<vmem>>, %arg11: memref<2x1xf32, #tpu.memory_space<vmem>>) attributes {dimension_semantics = [#tpu.dimension_semantics<arbitrary>], iteration_bounds = array<i64: 1>, scalar_prefetch = 0 : i64, scratch_operands = 0 : i64, tpu.core_type = #tpu.core_type<tc>, window_params = [{pipeline_mode = #tpu.pipeline_mode<synchronous>, transform_indices = @transform_0, window_bounds = array<i64: 2, 1024>}, {pipeline_mode = #tpu.pipeline_mode<synchronous>, transform_indices = @transform_1, window_bounds = array<i64: 1024, 512>}, {pipeline_mode = #tpu.pipeline_mode<synchronous>, transform_indices = @transform_2, window_bounds = array<i64: 512, 256>}, {pipeline_mode = #tpu.pipeline_mode<synchronous>, transform_indices = @transform_3, window_bounds = array<i64: 256, 128>}, {pipeline_mode = #tpu.pipeline_mode<synchronous>, transform_indices = @transform_4, window_bounds = array<i64: 128, 32>}, {pipeline_mode = #tpu.pipeline_mode<synchronous>, transform_indices = @transform_5, window_bounds = array<i64: 32, 1>}, {pipeline_mode = #tpu.pipeline_mode<synchronous>, transform_indices = @transform_6, window_bounds = array<i64: 256, 16>}, {pipeline_mode = #tpu.pipeline_mode<synchronous>, transform_indices = @transform_7, window_bounds = array<i64: 16, 256>}, {pipeline_mode = #tpu.pipeline_mode<synchronous>, transform_indices = @transform_8, window_bounds = array<i64: 128, 32>}, {pipeline_mode = #tpu.pipeline_mode<synchronous>, transform_indices = @transform_9, window_bounds = array<i64: 32, 128>}, {pipeline_mode = #tpu.pipeline_mode<synchronous>, transform_indices = @transform_10, window_bounds = array<i64: 2, 1>}]} {
    %c0 = arith.constant 0 : index
    %c0_0 = arith.constant 0 : index
    %0 = vector.load %arg1[%c0, %c0_0] : memref<2x1024xf32, #tpu.memory_space<vmem>>, vector<2x1024xf32>
    %1 = arith.truncf %0 : vector<2x1024xf32> to vector<2x1024xbf16>
    %c0_1 = arith.constant 0 : index
    %c0_2 = arith.constant 0 : index
    %2 = vector.load %arg2[%c0_1, %c0_2] : memref<1024x512xbf16, #tpu.memory_space<vmem>>, vector<1024x512xbf16>
    %cst = arith.constant dense<0.000000e+00> : vector<2x512xf32>
    %3 = tpu.matmul %1, %2, %cst {dimension_numbers = #tpu.dot_dimension_numbers<[1], [0], [0], [1], [0, 0, 1, 1], [], []>} : vector<2x1024xbf16>, vector<1024x512xbf16>, vector<2x512xf32> -> vector<2x512xf32>
    %cst_3 = arith.constant 2.000000e-01 : f32
    %4 = vector.broadcast %cst_3 : f32 to vector<2x512xf32>
    %5 = arith.mulf %4, %3 : vector<2x512xf32>
    %6 = arith.maximumf %3, %5 : vector<2x512xf32>
    %7 = arith.truncf %6 : vector<2x512xf32> to vector<2x512xbf16>
    %c0_4 = arith.constant 0 : index
    %c0_5 = arith.constant 0 : index
    %8 = vector.load %arg3[%c0_4, %c0_5] : memref<512x256xbf16, #tpu.memory_space<vmem>>, vector<512x256xbf16>
    %cst_6 = arith.constant dense<0.000000e+00> : vector<2x256xf32>
    %9 = tpu.matmul %7, %8, %cst_6 {dimension_numbers = #tpu.dot_dimension_numbers<[1], [0], [0], [1], [0, 0, 1, 1], [], []>} : vector<2x512xbf16>, vector<512x256xbf16>, vector<2x256xf32> -> vector<2x256xf32>
    %cst_7 = arith.constant dense<0.000000e+00> : vector<256xf32>
    %10 = vector.multi_reduction <add>, %9, %cst_7 [0] : vector<2x256xf32> to vector<256xf32>
    %11 = vector.shape_cast %10 : vector<256xf32> to vector<1x256xf32>
    %12 = arith.mulf %9, %9 : vector<2x256xf32>
    %cst_8 = arith.constant dense<0.000000e+00> : vector<256xf32>
    %13 = vector.multi_reduction <add>, %12, %cst_8 [0] : vector<2x256xf32> to vector<256xf32>
    %14 = vector.shape_cast %13 : vector<256xf32> to vector<1x256xf32>
    %c0_9 = arith.constant 0 : index
    %c0_10 = arith.constant 0 : index
    %15 = vector.load %arg7[%c0_9, %c0_10] : memref<256x16xf32, #tpu.memory_space<vmem>>, vector<256x16xf32>
    %cst_11 = arith.constant dense<0.000000e+00> : vector<1x16xf32>
    %16 = tpu.matmul %11, %15, %cst_11 {dimension_numbers = #tpu.dot_dimension_numbers<[1], [0], [0], [1], [0, 0, 1, 1], [], []>} : vector<1x256xf32>, vector<256x16xf32>, vector<1x16xf32> -> vector<1x16xf32>
    %c0_12 = arith.constant 0 : index
    %c0_13 = arith.constant 0 : index
    %17 = vector.load %arg7[%c0_12, %c0_13] : memref<256x16xf32, #tpu.memory_space<vmem>>, vector<256x16xf32>
    %cst_14 = arith.constant dense<0.000000e+00> : vector<1x16xf32>
    %18 = tpu.matmul %14, %17, %cst_14 {dimension_numbers = #tpu.dot_dimension_numbers<[1], [0], [0], [1], [0, 0, 1, 1], [], []>} : vector<1x256xf32>, vector<256x16xf32>, vector<1x16xf32> -> vector<1x16xf32>
    %cst_15 = arith.constant 3.200000e+01 : f32
    %19 = vector.broadcast %cst_15 : f32 to vector<1x16xf32>
    %20 = arith.divf %16, %19 : vector<1x16xf32>
    %cst_16 = arith.constant 3.200000e+01 : f32
    %21 = vector.broadcast %cst_16 : f32 to vector<1x16xf32>
    %22 = arith.divf %18, %21 : vector<1x16xf32>
    %23 = arith.mulf %20, %20 : vector<1x16xf32>
    %24 = arith.subf %22, %23 : vector<1x16xf32>
    %cst_17 = arith.constant 0.000000e+00 : f32
    %25 = vector.broadcast %cst_17 : f32 to vector<1x16xf32>
    %26 = arith.maximumf %24, %25 : vector<1x16xf32>
    %cst_18 = arith.constant 9.99999974E-6 : f32
    %27 = vector.broadcast %cst_18 : f32 to vector<1x16xf32>
    %28 = arith.addf %26, %27 : vector<1x16xf32>
    %29 = math.rsqrt %28 : vector<1x16xf32>
    %c0_19 = arith.constant 0 : index
    %c0_20 = arith.constant 0 : index
    %30 = vector.load %arg8[%c0_19, %c0_20] : memref<16x256xf32, #tpu.memory_space<vmem>>, vector<16x256xf32>
    %cst_21 = arith.constant dense<0.000000e+00> : vector<1x256xf32>
    %31 = tpu.matmul %20, %30, %cst_21 {dimension_numbers = #tpu.dot_dimension_numbers<[1], [0], [0], [1], [0, 0, 1, 1], [], []>} : vector<1x16xf32>, vector<16x256xf32>, vector<1x256xf32> -> vector<1x256xf32>
    %c0_22 = arith.constant 0 : index
    %c0_23 = arith.constant 0 : index
    %32 = vector.load %arg8[%c0_22, %c0_23] : memref<16x256xf32, #tpu.memory_space<vmem>>, vector<16x256xf32>
    %cst_24 = arith.constant dense<0.000000e+00> : vector<1x256xf32>
    %33 = tpu.matmul %29, %32, %cst_24 {dimension_numbers = #tpu.dot_dimension_numbers<[1], [0], [0], [1], [0, 0, 1, 1], [], []>} : vector<1x16xf32>, vector<16x256xf32>, vector<1x256xf32> -> vector<1x256xf32>
    %34 = vector.broadcast %31 : vector<1x256xf32> to vector<2x256xf32>
    %35 = arith.subf %9, %34 : vector<2x256xf32>
    %36 = vector.broadcast %33 : vector<1x256xf32> to vector<2x256xf32>
    %37 = arith.mulf %35, %36 : vector<2x256xf32>
    %cst_25 = arith.constant 2.000000e-01 : f32
    %38 = vector.broadcast %cst_25 : f32 to vector<2x256xf32>
    %39 = arith.mulf %38, %37 : vector<2x256xf32>
    %40 = arith.maximumf %37, %39 : vector<2x256xf32>
    %41 = arith.truncf %40 : vector<2x256xf32> to vector<2x256xbf16>
    %c0_26 = arith.constant 0 : index
    %c0_27 = arith.constant 0 : index
    %42 = vector.load %arg4[%c0_26, %c0_27] : memref<256x128xbf16, #tpu.memory_space<vmem>>, vector<256x128xbf16>
    %cst_28 = arith.constant dense<0.000000e+00> : vector<2x128xf32>
    %43 = tpu.matmul %41, %42, %cst_28 {dimension_numbers = #tpu.dot_dimension_numbers<[1], [0], [0], [1], [0, 0, 1, 1], [], []>} : vector<2x256xbf16>, vector<256x128xbf16>, vector<2x128xf32> -> vector<2x128xf32>
    %cst_29 = arith.constant dense<0.000000e+00> : vector<128xf32>
    %44 = vector.multi_reduction <add>, %43, %cst_29 [0] : vector<2x128xf32> to vector<128xf32>
    %45 = vector.shape_cast %44 : vector<128xf32> to vector<1x128xf32>
    %46 = arith.mulf %43, %43 : vector<2x128xf32>
    %cst_30 = arith.constant dense<0.000000e+00> : vector<128xf32>
    %47 = vector.multi_reduction <add>, %46, %cst_30 [0] : vector<2x128xf32> to vector<128xf32>
    %48 = vector.shape_cast %47 : vector<128xf32> to vector<1x128xf32>
    %c0_31 = arith.constant 0 : index
    %c0_32 = arith.constant 0 : index
    %49 = vector.load %arg9[%c0_31, %c0_32] : memref<128x32xf32, #tpu.memory_space<vmem>>, vector<128x32xf32>
    %cst_33 = arith.constant dense<0.000000e+00> : vector<1x32xf32>
    %50 = tpu.matmul %45, %49, %cst_33 {dimension_numbers = #tpu.dot_dimension_numbers<[1], [0], [0], [1], [0, 0, 1, 1], [], []>} : vector<1x128xf32>, vector<128x32xf32>, vector<1x32xf32> -> vector<1x32xf32>
    %c0_34 = arith.constant 0 : index
    %c0_35 = arith.constant 0 : index
    %51 = vector.load %arg9[%c0_34, %c0_35] : memref<128x32xf32, #tpu.memory_space<vmem>>, vector<128x32xf32>
    %cst_36 = arith.constant dense<0.000000e+00> : vector<1x32xf32>
    %52 = tpu.matmul %48, %51, %cst_36 {dimension_numbers = #tpu.dot_dimension_numbers<[1], [0], [0], [1], [0, 0, 1, 1], [], []>} : vector<1x128xf32>, vector<128x32xf32>, vector<1x32xf32> -> vector<1x32xf32>
    %cst_37 = arith.constant 8.000000e+00 : f32
    %53 = vector.broadcast %cst_37 : f32 to vector<1x32xf32>
    %54 = arith.divf %50, %53 : vector<1x32xf32>
    %cst_38 = arith.constant 8.000000e+00 : f32
    %55 = vector.broadcast %cst_38 : f32 to vector<1x32xf32>
    %56 = arith.divf %52, %55 : vector<1x32xf32>
    %57 = arith.mulf %54, %54 : vector<1x32xf32>
    %58 = arith.subf %56, %57 : vector<1x32xf32>
    %cst_39 = arith.constant 0.000000e+00 : f32
    %59 = vector.broadcast %cst_39 : f32 to vector<1x32xf32>
    %60 = arith.maximumf %58, %59 : vector<1x32xf32>
    %cst_40 = arith.constant 9.99999974E-6 : f32
    %61 = vector.broadcast %cst_40 : f32 to vector<1x32xf32>
    %62 = arith.addf %60, %61 : vector<1x32xf32>
    %63 = math.rsqrt %62 : vector<1x32xf32>
    %c0_41 = arith.constant 0 : index
    %c0_42 = arith.constant 0 : index
    %64 = vector.load %arg10[%c0_41, %c0_42] : memref<32x128xf32, #tpu.memory_space<vmem>>, vector<32x128xf32>
    %cst_43 = arith.constant dense<0.000000e+00> : vector<1x128xf32>
    %65 = tpu.matmul %54, %64, %cst_43 {dimension_numbers = #tpu.dot_dimension_numbers<[1], [0], [0], [1], [0, 0, 1, 1], [], []>} : vector<1x32xf32>, vector<32x128xf32>, vector<1x128xf32> -> vector<1x128xf32>
    %c0_44 = arith.constant 0 : index
    %c0_45 = arith.constant 0 : index
    %66 = vector.load %arg10[%c0_44, %c0_45] : memref<32x128xf32, #tpu.memory_space<vmem>>, vector<32x128xf32>
    %cst_46 = arith.constant dense<0.000000e+00> : vector<1x128xf32>
    %67 = tpu.matmul %63, %66, %cst_46 {dimension_numbers = #tpu.dot_dimension_numbers<[1], [0], [0], [1], [0, 0, 1, 1], [], []>} : vector<1x32xf32>, vector<32x128xf32>, vector<1x128xf32> -> vector<1x128xf32>
    %68 = vector.broadcast %65 : vector<1x128xf32> to vector<2x128xf32>
    %69 = arith.subf %43, %68 : vector<2x128xf32>
    %70 = vector.broadcast %67 : vector<1x128xf32> to vector<2x128xf32>
    %71 = arith.mulf %69, %70 : vector<2x128xf32>
    %cst_47 = arith.constant 2.000000e-01 : f32
    %72 = vector.broadcast %cst_47 : f32 to vector<2x128xf32>
    %73 = arith.mulf %72, %71 : vector<2x128xf32>
    %74 = arith.maximumf %71, %73 : vector<2x128xf32>
    %75 = arith.truncf %74 : vector<2x128xf32> to vector<2x128xbf16>
    %c0_48 = arith.constant 0 : index
    %c0_49 = arith.constant 0 : index
    %76 = vector.load %arg5[%c0_48, %c0_49] : memref<128x32xbf16, #tpu.memory_space<vmem>>, vector<128x32xbf16>
    %cst_50 = arith.constant dense<0.000000e+00> : vector<2x32xf32>
    %77 = tpu.matmul %75, %76, %cst_50 {dimension_numbers = #tpu.dot_dimension_numbers<[1], [0], [0], [1], [0, 0, 1, 1], [], []>} : vector<2x128xbf16>, vector<128x32xbf16>, vector<2x32xf32> -> vector<2x32xf32>
    %cst_51 = arith.constant dense<0.000000e+00> : vector<32xf32>
    %78 = vector.multi_reduction <add>, %77, %cst_51 [0] : vector<2x32xf32> to vector<32xf32>
    %79 = vector.shape_cast %78 : vector<32xf32> to vector<1x32xf32>
    %cst_52 = arith.constant 2.000000e+00 : f32
    %80 = vector.broadcast %cst_52 : f32 to vector<1x32xf32>
    %81 = arith.divf %79, %80 : vector<1x32xf32>
    %82 = arith.mulf %77, %77 : vector<2x32xf32>
    %cst_53 = arith.constant dense<0.000000e+00> : vector<32xf32>
    %83 = vector.multi_reduction <add>, %82, %cst_53 [0] : vector<2x32xf32> to vector<32xf32>
    %84 = vector.shape_cast %83 : vector<32xf32> to vector<1x32xf32>
    %cst_54 = arith.constant 2.000000e+00 : f32
    %85 = vector.broadcast %cst_54 : f32 to vector<1x32xf32>
    %86 = arith.divf %84, %85 : vector<1x32xf32>
    %87 = arith.mulf %81, %81 : vector<1x32xf32>
    %88 = arith.subf %86, %87 : vector<1x32xf32>
    %cst_55 = arith.constant 0.000000e+00 : f32
    %89 = vector.broadcast %cst_55 : f32 to vector<1x32xf32>
    %90 = arith.maximumf %88, %89 : vector<1x32xf32>
    %91 = vector.broadcast %81 : vector<1x32xf32> to vector<2x32xf32>
    %92 = arith.subf %77, %91 : vector<2x32xf32>
    %cst_56 = arith.constant 9.99999974E-6 : f32
    %93 = vector.broadcast %cst_56 : f32 to vector<1x32xf32>
    %94 = arith.addf %90, %93 : vector<1x32xf32>
    %95 = math.rsqrt %94 : vector<1x32xf32>
    %96 = vector.broadcast %95 : vector<1x32xf32> to vector<2x32xf32>
    %97 = arith.mulf %92, %96 : vector<2x32xf32>
    %cst_57 = arith.constant 2.000000e-01 : f32
    %98 = vector.broadcast %cst_57 : f32 to vector<2x32xf32>
    %99 = arith.mulf %98, %97 : vector<2x32xf32>
    %100 = arith.maximumf %97, %99 : vector<2x32xf32>
    %101 = arith.truncf %100 : vector<2x32xf32> to vector<2x32xbf16>
    %c0_58 = arith.constant 0 : index
    %c0_59 = arith.constant 0 : index
    %102 = vector.load %arg6[%c0_58, %c0_59] : memref<32x1xbf16, #tpu.memory_space<vmem>>, vector<32x1xbf16>
    %cst_60 = arith.constant dense<0.000000e+00> : vector<2x1xf32>
    %103 = tpu.matmul %101, %102, %cst_60 {dimension_numbers = #tpu.dot_dimension_numbers<[1], [0], [0], [1], [0, 0, 1, 1], [], []>} : vector<2x32xbf16>, vector<32x1xbf16>, vector<2x1xf32> -> vector<2x1xf32>
    %c0_61 = arith.constant 0 : index
    %c0_62 = arith.constant 0 : index
    %104 = vector.load %arg11[%c0_61, %c0_62] : memref<2x1xf32, #tpu.memory_space<vmem>>, vector<2x1xf32>
    tpu.vector_store %arg11[%c0_61, %c0_62], %103 {strides = array<i32>} : memref<2x1xf32, #tpu.memory_space<vmem>>, vector<2x1xf32>,
    return
  }
  func.func @transform_0(%arg0: i32) -> (i32, i32) {
    %c0_i32 = arith.constant 0 : i32
    %c0_i32_0 = arith.constant 0 : i32
    %c0_i32_1 = arith.constant 0 : i32
    return %c0_i32, %c0_i32_0 : i32, i32
  }
  func.func @transform_1(%arg0: i32) -> (i32, i32) {
    %c0_i32 = arith.constant 0 : i32
    %c0_i32_0 = arith.constant 0 : i32
    %c0_i32_1 = arith.constant 0 : i32
    return %c0_i32, %c0_i32_0 : i32, i32
  }
  func.func @transform_2(%arg0: i32) -> (i32, i32) {
    %c0_i32 = arith.constant 0 : i32
    %c0_i32_0 = arith.constant 0 : i32
    %c0_i32_1 = arith.constant 0 : i32
    return %c0_i32, %c0_i32_0 : i32, i32
  }
  func.func @transform_3(%arg0: i32) -> (i32, i32) {
    %c0_i32 = arith.constant 0 : i32
    %c0_i32_0 = arith.constant 0 : i32
    %c0_i32_1 = arith.constant 0 : i32
    return %c0_i32, %c0_i32_0 : i32, i32
  }
  func.func @transform_4(%arg0: i32) -> (i32, i32) {
    %c0_i32 = arith.constant 0 : i32
    %c0_i32_0 = arith.constant 0 : i32
    %c0_i32_1 = arith.constant 0 : i32
    return %c0_i32, %c0_i32_0 : i32, i32
  }
  func.func @transform_5(%arg0: i32) -> (i32, i32) {
    %c0_i32 = arith.constant 0 : i32
    %c0_i32_0 = arith.constant 0 : i32
    %c0_i32_1 = arith.constant 0 : i32
    return %c0_i32, %c0_i32_0 : i32, i32
  }
  func.func @transform_6(%arg0: i32) -> (i32, i32) {
    %c0_i32 = arith.constant 0 : i32
    %c0_i32_0 = arith.constant 0 : i32
    %c0_i32_1 = arith.constant 0 : i32
    return %c0_i32, %c0_i32_0 : i32, i32
  }
  func.func @transform_7(%arg0: i32) -> (i32, i32) {
    %c0_i32 = arith.constant 0 : i32
    %c0_i32_0 = arith.constant 0 : i32
    %c0_i32_1 = arith.constant 0 : i32
    return %c0_i32, %c0_i32_0 : i32, i32
  }
  func.func @transform_8(%arg0: i32) -> (i32, i32) {
    %c0_i32 = arith.constant 0 : i32
    %c0_i32_0 = arith.constant 0 : i32
    %c0_i32_1 = arith.constant 0 : i32
    return %c0_i32, %c0_i32_0 : i32, i32
  }
  func.func @transform_9(%arg0: i32) -> (i32, i32) {
    %c0_i32 = arith.constant 0 : i32
    %c0_i32_0 = arith.constant 0 : i32
    %c0_i32_1 = arith.constant 0 : i32
    return %c0_i32, %c0_i32_0 : i32, i32
  }
  func.func @transform_10(%arg0: i32) -> (i32, i32) {
    %c0_i32 = arith.constant 0 : i32
    %c0_i32_0 = arith.constant 0 : i32
    %c0_i32_1 = arith.constant 0 : i32
    return %c0_i32, %c0_i32_0 : i32, i32
  }
}

</mosaic_0001>

<bundles_post_ra>
// kernel: conv_encoder_forward.1
= control target key start
LH: loop header
LB: loop body
LE: loop exit
PB: predicated region body
PF: predicated region fallthrough
CT: control target
= control target key end

     0   :  { %15 = vsyncpa [#allocation3], 0  ;;  %s4870_s13 = smov [#allocation2]   ;;  %s5555_s0 = inlined_call_operand.vmem [shape: f32[2,1024], index: 0, kind: input, shape index: {}]   ;;  %s5556_s1 = inlined_call_operand.hbm [shape: bf16[1024,512], index: 1, kind: input, shape index: {}]   ;;  %s5557_s2 = inlined_call_operand.vmem [shape: bf16[512,256], index: 2, kind: input, shape index: {}]   ;;  %s5558_s3 = inlined_call_operand.vmem [shape: bf16[256,128], index: 3, kind: input, shape index: {}]   ;;  %s5559_s4 = inlined_call_operand.vmem [shape: bf16[128,32], index: 4, kind: input, shape index: {}]   ;;  %s5560_s5 = inlined_call_operand.vmem [shape: bf16[32,1], index: 5, kind: input, shape index: {}]   ;;  %s5561_s6 = inlined_call_operand.vmem [shape: f32[256,16], index: 6, kind: input, shape index: {}]   ;;  %s5562_s7 = inlined_call_operand.vmem [shape: f32[16,256], index: 7, kind: input, shape index: {}]   ;;  %s5563_s8 = inlined_call_operand.vmem [shape: f32[128,32], index: 8, kind: input, shape index: {}]   ;;  %s5564_s9 = inlined_call_operand.vmem [shape: f32[32,128], index: 9, kind: input, shape index: {}]   ;;  %s5565_s10 = inlined_call_operand.vmem [shape: f32[2,1], index: 10, kind: output, shape index: {}]  }
   0x1   :  { %s23_s14 = sshll.u32 %s4870_s13, 4  ;;  %s4846_s17 = scalar_lea.hbm %s5556_s1, 32768  ;;  %s24_s14 = int_to_ptr.vmem [resolvable:$true] %s23_s14 }
   0x2   :  { %p4847_p0 = scmp.ne.s32.totalorder %s5556_s1, %s4846_s17  ;;  %p4850_p1 = scmp.lt.u32.totalorder %s4846_s17, %s5556_s1 }
   0x4   :  { %p4852_p2 = pnand %p4850_p1, %p4847_p0 }
   0x6   :  { %4855 = shalt.err (!%p4852_p2)
}
   0x7   :  { %s4856_s22 = scalar_lea.vmem %s24_s14, 32768  ;;  %p4861_p4 = scmp.lt.s32.totalorder %s24_s14, %s24_s14 }
   0x8   :  { %p4857_p3 = scmp.ne.s32.totalorder %s24_s14, %s4856_s22  ;;  %p4862_p5 = scmp.lt.s32.totalorder %s4856_s22, %s4856_s22 }
   0xa   :  { %p4863_p6 = por %p4862_p5, %p4861_p4 }
   0xc   :  { %p4864_p7 = pnand %p4863_p6, %p4857_p3 }
   0xe   :  { %4867 = shalt.err (!%p4864_p7)
}
   0xf   :  { %s4871_s23 = smov 256   ;;  %s4872_s24 = smov 16  }
  0x10   :  { %29 = dma.hbm_to_vmem [thread:$0]  %s5556_s1, 32768, %s24_s14, [#allocation3], %s4871_s23, %s4871_s23, %s4872_s24  }
  0x11   :  { %4868 = dma.done.wait [#allocation3], 32768  }
  0x12   :  { %4869 = vsyncadd [#allocation3], 4294934528  ;;  %v4332_v0 = vld [vmem:[#allocation2 + $0x4] ss:$16 sps:$4 sm:$0xff]   ;;  %v4334_v1 = vld [vmem:[#allocation2 + $0xc] ss:$16 sps:$4 sm:$0xff]   ;;  %v58_v38 = vlaneseq }
  0x13   :  { %1640 = vmatprep.subr.bf16.mxu0 %v4332_v0  ;;  %v4336_v2 = vld [vmem:[#allocation2] ss:$16 sps:$4 sm:$0xff]   ;;  %v4337_v3 = vld [vmem:[#allocation2 + $0x8] ss:$16 sps:$4 sm:$0xff]   ;;  %1804 = vmatprep.subr.bf16.mxu1 %v4334_v1  ;;  %v4338_v4 = vld [vmem:[#allocation2 + $0x24] ss:$16 sps:$4 sm:$0xff]  }
  0x14   :  { %1641 = vmatpush1.bf16.msra.mxu0 %v4336_v2  ;;  %1805 = vmatpush1.bf16.msra.mxu1 %v4337_v3  ;;  %v4340_v5 = vld [vmem:[#allocation2 + $0x2c] ss:$16 sps:$4 sm:$0xff]   ;;  %v4342_v6 = vld [vmem:[#allocation2 + $0x20] ss:$16 sps:$4 sm:$0xff]   ;;  %v4343_v7 = vld [vmem:[#allocation2 + $0x28] ss:$16 sps:$4 sm:$0xff]  }
  0x15   :  { %1642 = vmatprep.subr.bf16.mxu0 %v4338_v4  ;;  %1806 = vmatprep.subr.bf16.mxu1 %v4340_v5  ;;  %v4344_v8 = vld [vmem:[#allocation2 + $0x44] ss:$16 sps:$4 sm:$0xff]   ;;  %v4346_v9 = vld [vmem:[#allocation2 + $0x4c] ss:$16 sps:$4 sm:$0xff]   ;;  %v4348_v10 = vld [vmem:[#allocation2 + $0x40] ss:$16 sps:$4 sm:$0xff]  }
  0x16   :  { %v4349_v11 = vld [vmem:[#allocation2 + $0x48] ss:$16 sps:$4 sm:$0xff]   ;;  %v4350_v12 = vld [vmem:[#allocation2 + $0x64] ss:$16 sps:$4 sm:$0xff]   ;;  %v4352_v13 = vld [vmem:[#allocation2 + $0x6c] ss:$16 sps:$4 sm:$0xff]  }
  0x17   :  { %v4354_v14 = vld [vmem:[#allocation2 + $0x60] ss:$16 sps:$4 sm:$0xff]   ;;  %v4355_v15 = vld [vmem:[#allocation2 + $0x68] ss:$16 sps:$4 sm:$0xff]   ;;  %v4356_v16 = vld [vmem:[#allocation2 + $0x84] ss:$16 sps:$4 sm:$0xff]  }
  0x18   :  { %1643 = vmatpush1.bf16.msra.mxu0 %v4342_v6  ;;  %1807 = vmatpush1.bf16.msra.mxu1 %v4343_v7  ;;  %v4358_v17 = vld [vmem:[#allocation2 + $0x8c] ss:$16 sps:$4 sm:$0xff]   ;;  %v4360_v18 = vld [vmem:[#allocation2 + $0x80] ss:$16 sps:$4 sm:$0xff]   ;;  %v4361_v19 = vld [vmem:[#allocation2 + $0x88] ss:$16 sps:$4 sm:$0xff]  }
  0x19   :  { %1644 = vmatprep.subr.bf16.mxu0 %v4344_v8  ;;  %1808 = vmatprep.subr.bf16.mxu1 %v4346_v9  ;;  %v4362_v20 = vld [vmem:[#allocation2 + $0xa4] ss:$16 sps:$4 sm:$0xff]   ;;  %v4364_v21 = vld [vmem:[#allocation2 + $0xac] ss:$16 sps:$4 sm:$0xff]   ;;  %v4366_v22 = vld [vmem:[#allocation2 + $0xa0] ss:$16 sps:$4 sm:$0xff]  }
  0x1a   :  { %v4367_v23 = vld [vmem:[#allocation2 + $0xa8] ss:$16 sps:$4 sm:$0xff]   ;;  %v4368_v24 = vld [vmem:[#allocation2 + $0xc4] ss:$16 sps:$4 sm:$0xff]   ;;  %v4370_v25 = vld [vmem:[#allocation2 + $0xcc] ss:$16 sps:$4 sm:$0xff]  }
  0x1b   :  { %v4372_v26 = vld [vmem:[#allocation2 + $0xc0] ss:$16 sps:$4 sm:$0xff]   ;;  %v4373_v27 = vld [vmem:[#allocation2 + $0xc8] ss:$16 sps:$4 sm:$0xff]   ;;  %v4374_v28 = vld [vmem:[#allocation2 + $0xe4] ss:$16 sps:$4 sm:$0xff]  }
  0x1c   :  { %1645 = vmatpush1.bf16.msra.mxu0 %v4348_v10  ;;  %1809 = vmatpush1.bf16.msra.mxu1 %v4349_v11  ;;  %v4376_v29 = vld [vmem:[#allocation2 + $0xec] ss:$16 sps:$4 sm:$0xff]   ;;  %v4378_v30 = vld [vmem:[#allocation2 + $0xe0] ss:$16 sps:$4 sm:$0xff]   ;;  %v4379_v31 = vld [vmem:[#allocation2 + $0xe8] ss:$16 sps:$4 sm:$0xff]  }
  0x1d   :  { %1646 = vmatprep.subr.bf16.mxu0 %v4350_v12  ;;  %1810 = vmatprep.subr.bf16.mxu1 %v4352_v13  ;;  %v4380_v32 = vld [vmem:[#allocation2 + $0x104] ss:$16 sps:$4 sm:$0xff]   ;;  %v4382_v33 = vld [vmem:[#allocation2 + $0x10c] ss:$16 sps:$4 sm:$0xff]   ;;  %v4384_v34 = vld [vmem:[#allocation2 + $0x100] ss:$16 sps:$4 sm:$0xff]  }
  0x1e   :  { %v4385_v35 = vld [vmem:[#allocation2 + $0x108] ss:$16 sps:$4 sm:$0xff]   ;;  %v4873_v36 = vmov 1983009808   ;;  %v4386_v39 = vld [vmem:[#allocation2 + $0x124] ss:$16 sps:$4 sm:$0xff]  }
  0x1f   :  { %v56_v37 = vunpack.c.l.s4 %v4873_v36  ;;  %v4388_v40 = vld [vmem:[#allocation2 + $0x12c] ss:$16 sps:$4 sm:$0xff]   ;;  %v4390_v41 = vld [vmem:[#allocation2 + $0x120] ss:$16 sps:$4 sm:$0xff]   ;;  %v4944_v43 = vshrl.u32 %v58_v38, 7  ;;  %vm2446_vm0 = vcmask 1041408  }
  0x20   :  { %1647 = vmatpush1.bf16.msra.mxu0 %v4354_v14  ;;  %1811 = vmatpush1.bf16.msra.mxu1 %v4355_v15  ;;  %v4391_v44 = vld [vmem:[#allocation2 + $0x128] ss:$16 sps:$4 sm:$0xff]   ;;  %v4392_v45 = vld [vmem:[#allocation2 + $0x144] ss:$16 sps:$4 sm:$0xff]   ;;  %v4394_v46 = vld [vmem:[#allocation2 + $0x14c] ss:$16 sps:$4 sm:$0xff]  }
  0x21   :  { %1648 = vmatprep.subr.bf16.mxu0 %v4356_v16  ;;  %1812 = vmatprep.subr.bf16.mxu1 %v4358_v17  ;;  %v57_v42 = vunpack.c.0.s8 %v56_v37  ;;  %v4396_v47 = vld [vmem:[#allocation2 + $0x140] ss:$16 sps:$4 sm:$0xff]   ;;  %v4397_v48 = vld [vmem:[#allocation2 + $0x148] ss:$16 sps:$4 sm:$0xff]   ;;  %v4398_v50 = vld [vmem:[#allocation2 + $0x164] ss:$16 sps:$4 sm:$0xff]  }
  0x22   :  { %v4400_v51 = vld [vmem:[#allocation2 + $0x16c] ss:$16 sps:$4 sm:$0xff]   ;;  %v50_v52 = vld [vmem:[%s5555_s0] sm:$0xff]  ;;  %v4403_v55 = vld [vmem:[#allocation2 + $0x168] ss:$16 sps:$4 sm:$0xff]   ;;  %vm2661_vm1 = vcmask 130048  }
  0x23   :  { %v4947_v49 = vsub.s32 %v57_v42, %v4944_v43  ;;  %v4402_v53 = vld [vmem:[#allocation2 + $0x160] ss:$16 sps:$4 sm:$0xff]   ;;  %v4404_v56 = vld [vmem:[#allocation2 + $0x184] ss:$16 sps:$4 sm:$0xff]   ;;  %v4406_v57 = vld [vmem:[#allocation2 + $0x18c] ss:$16 sps:$4 sm:$0xff]   ;;  %v54_v4 = vcombine.high %v50_v52, %v50_v52 }
  0x24   :  { %1649 = vmatpush1.bf16.msra.mxu0 %v4360_v18  ;;  %1813 = vmatpush1.bf16.msra.mxu1 %v4361_v19  ;;  %v4408_v59 = vld [vmem:[#allocation2 + $0x180] ss:$16 sps:$4 sm:$0xff]   ;;  %v4409_v61 = vld [vmem:[#allocation2 + $0x188] ss:$16 sps:$4 sm:$0xff]   ;;  %v4410_v62 = vld [vmem:[#allocation2 + $0x1a4] ss:$16 sps:$4 sm:$0xff]  }
  0x25   :  { %1650 = vmatprep.subr.bf16.mxu0 %v4362_v20  ;;  %1814 = vmatprep.subr.bf16.mxu1 %v4364_v21  ;;  %v61_v54 = vrot.slane %v50_v52, %v4947_v49  ;;  %v4412_v63 = vld [vmem:[#allocation2 + $0x1ac] ss:$16 sps:$4 sm:$0xff]   ;;  %v4414_v0 = vld [vmem:[#allocation2 + $0x1a0] ss:$16 sps:$4 sm:$0xff]   ;;  %v4415_v1 = vld [vmem:[#allocation2 + $0x1a8] ss:$16 sps:$4 sm:$0xff]   ;;  %v4954_v9 = vrot.slane %v54_v4, %v4947_v49 }
  0x26   :  { %v4416_v2 = vld [vmem:[#allocation2 + $0x1c4] ss:$16 sps:$4 sm:$0xff]   ;;  %v4418_v3 = vld [vmem:[#allocation2 + $0x1cc] ss:$16 sps:$4 sm:$0xff]   ;;  %v4420_v5 = vld [vmem:[#allocation2 + $0x1c0] ss:$16 sps:$4 sm:$0xff]  }
  0x27   :  { %v69_v58 = vcombine.high %v61_v54, %v61_v54  ;;  %v4421_v6 = vld [vmem:[#allocation2 + $0x1c8] ss:$16 sps:$4 sm:$0xff]   ;;  %v4422_v7 = vld [vmem:[#allocation2 + $0x1e4] ss:$16 sps:$4 sm:$0xff]   ;;  %v4424_v8 = vld [vmem:[#allocation2 + $0x1ec] ss:$16 sps:$4 sm:$0xff]   ;;  %v70_v14 = vcombine.high %v4954_v9, %v4954_v9  ;;  %v96_v16 = vpack.c.bf16 %v61_v54, %v61_v54 }
  0x28   :  { %1651 = vmatpush1.bf16.msra.mxu0 %v4366_v22  ;;  %1815 = vmatpush1.bf16.msra.mxu1 %v4367_v23  ;;  %v4426_v10 = vld [vmem:[#allocation2 + $0x1e0] ss:$16 sps:$4 sm:$0xff]   ;;  %v4427_v11 = vld [vmem:[#allocation2 + $0x1e8] ss:$16 sps:$4 sm:$0xff]   ;;  %v4431_v12 = vld [vmem:[#allocation2 + $0x204] ss:$16 sps:$4 sm:$0xff]  }
  0x29   :  { %1652 = vmatprep.subr.bf16.mxu0 %v4368_v24  ;;  %1816 = vmatprep.subr.bf16.mxu1 %v4370_v25  ;;  %v97_v60 = vpack.c.bf16 %v69_v58, %v69_v58  ;;  %v4434_v13 = vld [vmem:[#allocation2 + $0x20c] ss:$16 sps:$4 sm:$0xff]   ;;  %v4429_v15 = vld [vmem:[#allocation2 + $0x200] ss:$16 sps:$4 sm:$0xff]   ;;  %v4432_v17 = vld [vmem:[#allocation2 + $0x208] ss:$16 sps:$4 sm:$0xff]   ;;  %v99_v20 = vpack.c.bf16 %v70_v14, %v70_v14 }
  0x2a   :  { %v4437_v18 = vld [vmem:[#allocation2 + $0x224] ss:$16 sps:$4 sm:$0xff]   ;;  %v4440_v19 = vld [vmem:[#allocation2 + $0x22c] ss:$16 sps:$4 sm:$0xff]   ;;  %v4435_v21 = vld [vmem:[#allocation2 + $0x220] ss:$16 sps:$4 sm:$0xff]  }
  0x2b   :  { %1672 = vmatprep.mubr.bf16.mxu0 %v97_v60  ;;  %1836 = vmatprep.mubr.bf16.mxu1 %v97_v60  ;;  %v4438_v22 = vld [vmem:[#allocation2 + $0x228] ss:$16 sps:$4 sm:$0xff]   ;;  %v4443_v23 = vld [vmem:[#allocation2 + $0x244] ss:$16 sps:$4 sm:$0xff]   ;;  %v4446_v24 = vld [vmem:[#allocation2 + $0x24c] ss:$16 sps:$4 sm:$0xff]  }
  0x2c   :  { %1653 = vmatpush1.bf16.msra.mxu0 %v4372_v26  ;;  %1817 = vmatpush1.bf16.msra.mxu1 %v4373_v27  ;;  %v4441_v25 = vld [vmem:[#allocation2 + $0x240] ss:$16 sps:$4 sm:$0xff]   ;;  %v4444_v26 = vld [vmem:[#allocation2 + $0x248] ss:$16 sps:$4 sm:$0xff]   ;;  %v4449_v27 = vld [vmem:[#allocation2 + $0x264] ss:$16 sps:$4 sm:$0xff]  }
  0x2d   :  { %1654 = vmatprep.subr.bf16.mxu0 %v4374_v28  ;;  %1818 = vmatprep.subr.bf16.mxu1 %v4376_v29  ;;  %v4452_v28 = vld [vmem:[#allocation2 + $0x26c] ss:$16 sps:$4 sm:$0xff]   ;;  %v4447_v29 = vld [vmem:[#allocation2 + $0x260] ss:$16 sps:$4 sm:$0xff]   ;;  %v4462_v38 = vld [vmem:[#allocation2 + $0x2a8] ss:$16 sps:$4 sm:$0xff]  }
  0x2e   :  { %v4464_v36 = vld [vmem:[#allocation2 + $0x2ac] ss:$16 sps:$4 sm:$0xff]   ;;  %v4459_v37 = vld [vmem:[#allocation2 + $0x2a0] ss:$16 sps:$4 sm:$0xff]   ;;  %v4468_v42 = vld [vmem:[#allocation2 + $0x2c8] ss:$16 sps:$4 sm:$0xff]  }
  0x2f   :  { %v4480_v52 = vld [vmem:[#allocation2 + $0x308] ss:$16 sps:$4 sm:$0xff]   ;;  %v4488_v54 = vld [vmem:[#allocation2 + $0x32c] ss:$16 sps:$4 sm:$0xff]   ;;  %v4521_v14 = vld [vmem:[#allocation2 + $0x3e4] ss:$16 sps:$4 sm:$0xff]  }
  0x30   :  { %1655 = vmatpush1.bf16.msra.mxu0 %v4378_v30  ;;  %1819 = vmatpush1.bf16.msra.mxu1 %v4379_v31  ;;  %v4450_v30 = vld [vmem:[#allocation2 + $0x268] ss:$16 sps:$4 sm:$0xff]   ;;  %v4455_v31 = vld [vmem:[#allocation2 + $0x284] ss:$16 sps:$4 sm:$0xff]   ;;  %v4494_v58 = vld [vmem:[#allocation2 + $0x34c] ss:$16 sps:$4 sm:$0xff]  }
  0x31   :  { %1656 = vmatprep.subr.bf16.mxu0 %v4380_v32  ;;  %1820 = vmatprep.subr.bf16.mxu1 %v4382_v33  ;;  %v4458_v32 = vld [vmem:[#allocation2 + $0x28c] ss:$16 sps:$4 sm:$0xff]   ;;  %v4453_v33 = vld [vmem:[#allocation2 + $0x280] ss:$16 sps:$4 sm:$0xff]   ;;  %v4492_v60 = vld [vmem:[#allocation2 + $0x348] ss:$16 sps:$4 sm:$0xff]  }
  0x32   :  { %v4504_v4 = vld [vmem:[#allocation2 + $0x388] ss:$16 sps:$4 sm:$0xff]   ;;  %vm4876_vm2 = vmmov 0   ;;  %vm3187_vm3 = vcmask 261120   ;;  %vm3451_vm4 = vcmask 254976   ;;  %vm3539_vm5 = vcmask 1024  }
  0x34   :  { %1657 = vmatpush1.bf16.msra.mxu0 %v4384_v34  ;;  %1821 = vmatpush1.bf16.msra.mxu1 %v4385_v35  ;;  %v4456_v34 = vld [vmem:[#allocation2 + $0x288] ss:$16 sps:$4 sm:$0xff]   ;;  %v4461_v35 = vld [vmem:[#allocation2 + $0x2a4] ss:$16 sps:$4 sm:$0xff]  }
  0x35   :  { %1658 = vmatprep.subr.bf16.mxu0 %v4386_v39  ;;  %1822 = vmatprep.subr.bf16.mxu1 %v4388_v40  ;;  %v4467_v39 = vld [vmem:[#allocation2 + $0x2c4] ss:$16 sps:$4 sm:$0xff]   ;;  %v4470_v40 = vld [vmem:[#allocation2 + $0x2cc] ss:$16 sps:$4 sm:$0xff]  }
  0x38   :  { %1659 = vmatpush1.bf16.msra.mxu0 %v4390_v41  ;;  %1823 = vmatpush1.bf16.msra.mxu1 %v4391_v44  ;;  %v4465_v41 = vld [vmem:[#allocation2 + $0x2c0] ss:$16 sps:$4 sm:$0xff]   ;;  %v4473_v44 = vld [vmem:[#allocation2 + $0x2e4] ss:$16 sps:$4 sm:$0xff]  }
  0x39   :  { %1660 = vmatprep.subr.bf16.mxu0 %v4392_v45  ;;  %1824 = vmatprep.subr.bf16.mxu1 %v4394_v46  ;;  %v4476_v45 = vld [vmem:[#allocation2 + $0x2ec] ss:$16 sps:$4 sm:$0xff]   ;;  %v4471_v46 = vld [vmem:[#allocation2 + $0x2e0] ss:$16 sps:$4 sm:$0xff]  }
  0x3c   :  { %1661 = vmatpush1.bf16.msra.mxu0 %v4396_v47  ;;  %1825 = vmatpush1.bf16.msra.mxu1 %v4397_v48  ;;  %v4474_v47 = vld [vmem:[#allocation2 + $0x2e8] ss:$16 sps:$4 sm:$0xff]   ;;  %v4479_v48 = vld [vmem:[#allocation2 + $0x304] ss:$16 sps:$4 sm:$0xff]  }
  0x3d   :  { %1662 = vmatprep.subr.bf16.mxu0 %v4398_v50  ;;  %1826 = vmatprep.subr.bf16.mxu1 %v4400_v51  ;;  %v4482_v50 = vld [vmem:[#allocation2 + $0x30c] ss:$16 sps:$4 sm:$0xff]   ;;  %v4477_v51 = vld [vmem:[#allocation2 + $0x300] ss:$16 sps:$4 sm:$0xff]  }
  0x40   :  { %1663 = vmatpush1.bf16.msra.mxu0 %v4402_v53  ;;  %1827 = vmatpush1.bf16.msra.mxu1 %v4403_v55  ;;  %v4485_v53 = vld [vmem:[#allocation2 + $0x324] ss:$16 sps:$4 sm:$0xff]   ;;  %v4483_v55 = vld [vmem:[#allocation2 + $0x320] ss:$16 sps:$4 sm:$0xff]  }
  0x41   :  { %1664 = vmatprep.subr.bf16.mxu0 %v4404_v56  ;;  %1828 = vmatprep.subr.bf16.mxu1 %v4406_v57  ;;  %v4486_v56 = vld [vmem:[#allocation2 + $0x328] ss:$16 sps:$4 sm:$0xff]   ;;  %v4491_v57 = vld [vmem:[#allocation2 + $0x344] ss:$16 sps:$4 sm:$0xff]  }
  0x44   :  { %1665 = vmatpush1.bf16.msra.mxu0 %v4408_v59  ;;  %1829 = vmatpush1.bf16.msra.mxu1 %v4409_v61  ;;  %v4489_v59 = vld [vmem:[#allocation2 + $0x340] ss:$16 sps:$4 sm:$0xff]   ;;  %v4497_v61 = vld [vmem:[#allocation2 + $0x364] ss:$16 sps:$4 sm:$0xff]  }
  0x45   :  { %1666 = vmatprep.subr.bf16.mxu0 %v4410_v62  ;;  %1830 = vmatprep.subr.bf16.mxu1 %v4412_v63  ;;  %v4500_v62 = vld [vmem:[#allocation2 + $0x36c] ss:$16 sps:$4 sm:$0xff]   ;;  %v4495_v63 = vld [vmem:[#allocation2 + $0x360] ss:$16 sps:$4 sm:$0xff]  }
  0x48   :  { %1667 = vmatpush1.bf16.msra.mxu0 %v4414_v0  ;;  %1831 = vmatpush1.bf16.msra.mxu1 %v4415_v1  ;;  %v4498_v0 = vld [vmem:[#allocation2 + $0x368] ss:$16 sps:$4 sm:$0xff]   ;;  %v4503_v1 = vld [vmem:[#allocation2 + $0x384] ss:$16 sps:$4 sm:$0xff]  }
  0x49   :  { %1668 = vmatprep.subr.bf16.mxu0 %v4416_v2  ;;  %1832 = vmatprep.subr.bf16.mxu1 %v4418_v3  ;;  %v4506_v2 = vld [vmem:[#allocation2 + $0x38c] ss:$16 sps:$4 sm:$0xff]   ;;  %v4501_v3 = vld [vmem:[#allocation2 + $0x380] ss:$16 sps:$4 sm:$0xff]  }
  0x4c   :  { %1669 = vmatpush1.bf16.msra.mxu0 %v4420_v5  ;;  %1833 = vmatpush1.bf16.msra.mxu1 %v4421_v6  ;;  %v4509_v5 = vld [vmem:[#allocation2 + $0x3a4] ss:$16 sps:$4 sm:$0xff]   ;;  %v4512_v6 = vld [vmem:[#allocation2 + $0x3ac] ss:$16 sps:$4 sm:$0xff]  }
  0x4d   :  { %1670 = vmatprep.subr.bf16.mxu0 %v4422_v7  ;;  %1834 = vmatprep.subr.bf16.mxu1 %v4424_v8  ;;  %v4507_v7 = vld [vmem:[#allocation2 + $0x3a0] ss:$16 sps:$4 sm:$0xff]   ;;  %v4510_v8 = vld [vmem:[#allocation2 + $0x3a8] ss:$16 sps:$4 sm:$0xff]  }
  0x50   :  { %1671 = vmatpush1.bf16.msra.mxu0 %v4426_v10  ;;  %1835 = vmatpush1.bf16.msra.mxu1 %v4427_v11  ;;  %v4515_v10 = vld [vmem:[#allocation2 + $0x3c4] ss:$16 sps:$4 sm:$0xff]   ;;  %v4518_v11 = vld [vmem:[#allocation2 + $0x3cc] ss:$16 sps:$4 sm:$0xff]  }
  0x51   :  { %1681 = vmatprep.subr.bf16.mxu0 %v4431_v12  ;;  %1845 = vmatprep.subr.bf16.mxu1 %v4434_v13  ;;  %v4513_v12 = vld [vmem:[#allocation2 + $0x3c0] ss:$16 sps:$4 sm:$0xff]   ;;  %v4516_v13 = vld [vmem:[#allocation2 + $0x3c8] ss:$16 sps:$4 sm:$0xff]  }
  0x53   :  { %1673 = vmatmul.mubr.bf16.vlgmr.msra.gmra.mrb[0].mxu0 %v96_v16  ;;  %1837 = vmatmul.mubr.bf16.vlgmr.msra.gmra.mrb[0].mxu1 %v96_v16  ;;  %v4519_v16 = vld [vmem:[#allocation2 + $0x3e0] ss:$16 sps:$4 sm:$0xff]  }
  0x54   :  { %1682 = vmatpush1.bf16.msra.mxu0 %v4429_v15  ;;  %1846 = vmatpush1.bf16.msra.mxu1 %v4432_v17  ;;  %v4524_v15 = vld [vmem:[#allocation2 + $0x3ec] ss:$16 sps:$4 sm:$0xff]   ;;  %v4522_v17 = vld [vmem:[#allocation2 + $0x3e8] ss:$16 sps:$4 sm:$0xff]  }
  0x55   :  { %1683 = vmatprep.subr.bf16.mxu0 %v4437_v18  ;;  %1847 = vmatprep.subr.bf16.mxu1 %v4440_v19  ;;  %v4527_v18 = vld [vmem:[#allocation2 + $0x404] ss:$16 sps:$4 sm:$0xff]   ;;  %v4530_v19 = vld [vmem:[#allocation2 + $0x40c] ss:$16 sps:$4 sm:$0xff]  }
  0x56   :  { %1713 = vmatprep.mubr.bf16.mxu0 %v99_v20  ;;  %1877 = vmatprep.mubr.bf16.mxu1 %v99_v20  ;;  %v4525_v20 = vld [vmem:[#allocation2 + $0x400] ss:$16 sps:$4 sm:$0xff]  }
  0x58   :  { %1684 = vmatpush1.bf16.msra.mxu0 %v4435_v21  ;;  %1848 = vmatpush1.bf16.msra.mxu1 %v4438_v22  ;;  %v98_v21 = vpack.c.bf16 %v4954_v9, %v4954_v9  ;;  %v4528_v22 = vld [vmem:[#allocation2 + $0x408] ss:$16 sps:$4 sm:$0xff]  }
  0x59   :  { %1685 = vmatprep.subr.bf16.mxu0 %v4443_v23  ;;  %1849 = vmatprep.subr.bf16.mxu1 %v4446_v24  ;;  %v4963_v23 = vld [vmem:[%s5555_s0 + $0x8] sm:$0xff]  ;;  %v4533_v24 = vld [vmem:[#allocation2 + $0x424] ss:$16 sps:$4 sm:$0xff]  }
  0x5c   :  { %1686 = vmatpush1.bf16.msra.mxu0 %v4441_v25  ;;  %1850 = vmatpush1.bf16.msra.mxu1 %v4444_v26  ;;  %v4536_v25 = vld [vmem:[#allocation2 + $0x42c] ss:$16 sps:$4 sm:$0xff]   ;;  %v4967_v26 = vrot.slane %v4963_v23, %v4947_v49 }
  0x5d   :  { %1687 = vmatprep.subr.bf16.mxu0 %v4449_v27  ;;  %1851 = vmatprep.subr.bf16.mxu1 %v4452_v28  ;;  %v4531_v27 = vld [vmem:[#allocation2 + $0x420] ss:$16 sps:$4 sm:$0xff]   ;;  %v4534_v28 = vld [vmem:[#allocation2 + $0x428] ss:$16 sps:$4 sm:$0xff]  }
  0x5e   :  { %v86_v9 = vcombine.high %v4967_v26, %v4967_v26 }
  0x60   :  { %1688 = vmatpush1.bf16.msra.mxu0 %v4447_v29  ;;  %1852 = vmatpush1.bf16.msra.mxu1 %v4450_v30  ;;  %v4539_v29 = vld [vmem:[#allocation2 + $0x444] ss:$16 sps:$4 sm:$0xff]   ;;  %v4542_v30 = vld [vmem:[#allocation2 + $0x44c] ss:$16 sps:$4 sm:$0xff]  }
  0x61   :  { %1689 = vmatprep.subr.bf16.mxu0 %v4455_v31  ;;  %1853 = vmatprep.subr.bf16.mxu1 %v4458_v32  ;;  %v101_v31 = vpack.c.bf16 %v86_v9, %v86_v9  ;;  %v4537_v32 = vld [vmem:[#allocation2 + $0x440] ss:$16 sps:$4 sm:$0xff]  }
  0x62   :  { %v4615_v9 = vld [vmem:[#allocation2 + $0x5e0] ss:$16 sps:$4 sm:$0xff]  }
  0x64   :  { %1690 = vmatpush1.bf16.msra.mxu0 %v4453_v33  ;;  %1854 = vmatpush1.bf16.msra.mxu1 %v4456_v34  ;;  %v4540_v33 = vld [vmem:[#allocation2 + $0x448] ss:$16 sps:$4 sm:$0xff]   ;;  %v4545_v34 = vld [vmem:[#allocation2 + $0x464] ss:$16 sps:$4 sm:$0xff]  }
  0x65   :  { %1691 = vmatprep.subr.bf16.mxu0 %v4461_v35  ;;  %1855 = vmatprep.subr.bf16.mxu1 %v4464_v36  ;;  %v4548_v35 = vld [vmem:[#allocation2 + $0x46c] ss:$16 sps:$4 sm:$0xff]   ;;  %v4543_v36 = vld [vmem:[#allocation2 + $0x460] ss:$16 sps:$4 sm:$0xff]  }
  0x68   :  { %1692 = vmatpush1.bf16.msra.mxu0 %v4459_v37  ;;  %1856 = vmatpush1.bf16.msra.mxu1 %v4462_v38  ;;  %v4546_v37 = vld [vmem:[#allocation2 + $0x468] ss:$16 sps:$4 sm:$0xff]   ;;  %v4551_v38 = vld [vmem:[#allocation2 + $0x484] ss:$16 sps:$4 sm:$0xff]  }
  0x69   :  { %1693 = vmatprep.subr.bf16.mxu0 %v4467_v39  ;;  %1857 = vmatprep.subr.bf16.mxu1 %v4470_v40  ;;  %v4554_v39 = vld [vmem:[#allocation2 + $0x48c] ss:$16 sps:$4 sm:$0xff]   ;;  %v4549_v40 = vld [vmem:[#allocation2 + $0x480] ss:$16 sps:$4 sm:$0xff]  }
  0x6c   :  { %1694 = vmatpush1.bf16.msra.mxu0 %v4465_v41  ;;  %1858 = vmatpush1.bf16.msra.mxu1 %v4468_v42  ;;  %v4552_v41 = vld [vmem:[#allocation2 + $0x488] ss:$16 sps:$4 sm:$0xff]   ;;  %v4557_v42 = vld [vmem:[#allocation2 + $0x4a4] ss:$16 sps:$4 sm:$0xff]  }
  0x6d   :  { %1695 = vmatprep.subr.bf16.mxu0 %v4473_v44  ;;  %1859 = vmatprep.subr.bf16.mxu1 %v4476_v45  ;;  %v4560_v44 = vld [vmem:[#allocation2 + $0x4ac] ss:$16 sps:$4 sm:$0xff]   ;;  %v4555_v45 = vld [vmem:[#allocation2 + $0x4a0] ss:$16 sps:$4 sm:$0xff]  }
  0x70   :  { %1696 = vmatpush1.bf16.msra.mxu0 %v4471_v46  ;;  %1860 = vmatpush1.bf16.msra.mxu1 %v4474_v47  ;;  %v4558_v46 = vld [vmem:[#allocation2 + $0x4a8] ss:$16 sps:$4 sm:$0xff]   ;;  %v4563_v47 = vld [vmem:[#allocation2 + $0x4c4] ss:$16 sps:$4 sm:$0xff]  }
  0x71   :  { %1697 = vmatprep.subr.bf16.mxu0 %v4479_v48  ;;  %1861 = vmatprep.subr.bf16.mxu1 %v4482_v50  ;;  %v4566_v48 = vld [vmem:[#allocation2 + $0x4cc] ss:$16 sps:$4 sm:$0xff]   ;;  %v4561_v50 = vld [vmem:[#allocation2 + $0x4c0] ss:$16 sps:$4 sm:$0xff]  }
  0x74   :  { %1698 = vmatpush1.bf16.msra.mxu0 %v4477_v51  ;;  %1862 = vmatpush1.bf16.msra.mxu1 %v4480_v52  ;;  %v4564_v51 = vld [vmem:[#allocation2 + $0x4c8] ss:$16 sps:$4 sm:$0xff]   ;;  %v4569_v52 = vld [vmem:[#allocation2 + $0x4e4] ss:$16 sps:$4 sm:$0xff]  }
  0x75   :  { %1699 = vmatprep.subr.bf16.mxu0 %v4485_v53  ;;  %1863 = vmatprep.subr.bf16.mxu1 %v4488_v54  ;;  %v4572_v53 = vld [vmem:[#allocation2 + $0x4ec] ss:$16 sps:$4 sm:$0xff]   ;;  %v4567_v54 = vld [vmem:[#allocation2 + $0x4e0] ss:$16 sps:$4 sm:$0xff]  }
  0x78   :  { %1700 = vmatpush1.bf16.msra.mxu0 %v4483_v55  ;;  %1864 = vmatpush1.bf16.msra.mxu1 %v4486_v56  ;;  %v4570_v55 = vld [vmem:[#allocation2 + $0x4e8] ss:$16 sps:$4 sm:$0xff]   ;;  %v4575_v56 = vld [vmem:[#allocation2 + $0x504] ss:$16 sps:$4 sm:$0xff]  }
  0x79   :  { %1701 = vmatprep.subr.bf16.mxu0 %v4491_v57  ;;  %1865 = vmatprep.subr.bf16.mxu1 %v4494_v58  ;;  %v4578_v57 = vld [vmem:[#allocation2 + $0x50c] ss:$16 sps:$4 sm:$0xff]   ;;  %v4573_v58 = vld [vmem:[#allocation2 + $0x500] ss:$16 sps:$4 sm:$0xff]  }
  0x7c   :  { %1702 = vmatpush1.bf16.msra.mxu0 %v4489_v59  ;;  %1866 = vmatpush1.bf16.msra.mxu1 %v4492_v60  ;;  %v4576_v59 = vld [vmem:[#allocation2 + $0x508] ss:$16 sps:$4 sm:$0xff]   ;;  %v4581_v60 = vld [vmem:[#allocation2 + $0x524] ss:$16 sps:$4 sm:$0xff]  }
  0x7d   :  { %1703 = vmatprep.subr.bf16.mxu0 %v4497_v61  ;;  %1867 = vmatprep.subr.bf16.mxu1 %v4500_v62  ;;  %v4584_v61 = vld [vmem:[#allocation2 + $0x52c] ss:$16 sps:$4 sm:$0xff]   ;;  %v4579_v62 = vld [vmem:[#allocation2 + $0x520] ss:$16 sps:$4 sm:$0xff]  }
  0x80   :  { %1704 = vmatpush1.bf16.msra.mxu0 %v4495_v63  ;;  %1868 = vmatpush1.bf16.msra.mxu1 %v4498_v0  ;;  %v4582_v63 = vld [vmem:[#allocation2 + $0x528] ss:$16 sps:$4 sm:$0xff]   ;;  %v4587_v0 = vld [vmem:[#allocation2 + $0x544] ss:$16 sps:$4 sm:$0xff]  }
  0x81   :  { %1705 = vmatprep.subr.bf16.mxu0 %v4503_v1  ;;  %1869 = vmatprep.subr.bf16.mxu1 %v4506_v2  ;;  %v4590_v1 = vld [vmem:[#allocation2 + $0x54c] ss:$16 sps:$4 sm:$0xff]   ;;  %v4585_v2 = vld [vmem:[#allocation2 + $0x540] ss:$16 sps:$4 sm:$0xff]  }
  0x84   :  { %1706 = vmatpush1.bf16.msra.mxu0 %v4501_v3  ;;  %1870 = vmatpush1.bf16.msra.mxu1 %v4504_v4  ;;  %v4588_v3 = vld [vmem:[#allocation2 + $0x548] ss:$16 sps:$4 sm:$0xff]   ;;  %v4593_v4 = vld [vmem:[#allocation2 + $0x564] ss:$16 sps:$4 sm:$0xff]  }
  0x85   :  { %1707 = vmatprep.subr.bf16.mxu0 %v4509_v5  ;;  %1871 = vmatprep.subr.bf16.mxu1 %v4512_v6  ;;  %v4596_v5 = vld [vmem:[#allocation2 + $0x56c] ss:$16 sps:$4 sm:$0xff]   ;;  %v4591_v6 = vld [vmem:[#allocation2 + $0x560] ss:$16 sps:$4 sm:$0xff]  }
  0x88   :  { %1708 = vmatpush1.bf16.msra.mxu0 %v4507_v7  ;;  %1872 = vmatpush1.bf16.msra.mxu1 %v4510_v8  ;;  %v4594_v7 = vld [vmem:[#allocation2 + $0x568] ss:$16 sps:$4 sm:$0xff]   ;;  %v4599_v8 = vld [vmem:[#allocation2 + $0x584] ss:$16 sps:$4 sm:$0xff]  }
  0x89   :  { %1709 = vmatprep.subr.bf16.mxu0 %v4515_v10  ;;  %1873 = vmatprep.subr.bf16.mxu1 %v4518_v11  ;;  %v4602_v10 = vld [vmem:[#allocation2 + $0x58c] ss:$16 sps:$4 sm:$0xff]   ;;  %v4597_v11 = vld [vmem:[#allocation2 + $0x580] ss:$16 sps:$4 sm:$0xff]  }
  0x8c   :  { %1710 = vmatpush1.bf16.msra.mxu0 %v4513_v12  ;;  %1874 = vmatpush1.bf16.msra.mxu1 %v4516_v13  ;;  %v4600_v12 = vld [vmem:[#allocation2 + $0x588] ss:$16 sps:$4 sm:$0xff]   ;;  %v4605_v13 = vld [vmem:[#allocation2 + $0x5a4] ss:$16 sps:$4 sm:$0xff]  }
  0x8d   :  { %1711 = vmatprep.subr.bf16.mxu0 %v4521_v14  ;;  %1875 = vmatprep.subr.bf16.mxu1 %v4524_v15  ;;  %v4608_v14 = vld [vmem:[#allocation2 + $0x5ac] ss:$16 sps:$4 sm:$0xff]   ;;  %v4603_v15 = vld [vmem:[#allocation2 + $0x5a0] ss:$16 sps:$4 sm:$0xff]  }
  0x90   :  { %1712 = vmatpush1.bf16.msra.mxu0 %v4519_v16  ;;  %1876 = vmatpush1.bf16.msra.mxu1 %v4522_v17  ;;  %v4606_v16 = vld [vmem:[#allocation2 + $0x5a8] ss:$16 sps:$4 sm:$0xff]   ;;  %v4611_v17 = vld [vmem:[#allocation2 + $0x5c4] ss:$16 sps:$4 sm:$0xff]  }
  0x91   :  { %1722 = vmatprep.subr.bf16.mxu0 %v4527_v18  ;;  %1886 = vmatprep.subr.bf16.mxu1 %v4530_v19  ;;  %v4614_v18 = vld [vmem:[#allocation2 + $0x5cc] ss:$16 sps:$4 sm:$0xff]   ;;  %v71_v19 = vcombine.high %v4963_v23, %v4963_v23  ;;  %v4621_v23 = vld [vmem:[#allocation2 + $0x600] ss:$16 sps:$4 sm:$0xff]  }
  0x93   :  { %1714 = vmatmul.mubr.bf16.vlgmr.msra.gmra.mrb[0].mxu0 %v98_v21  ;;  %1878 = vmatmul.mubr.bf16.vlgmr.msra.gmra.mrb[0].mxu1 %v98_v21  ;;  %v4612_v21 = vld [vmem:[#allocation2 + $0x5c8] ss:$16 sps:$4 sm:$0xff]  }
  0x94   :  { %1723 = vmatpush1.bf16.msra.mxu0 %v4525_v20  ;;  %1887 = vmatpush1.bf16.msra.mxu1 %v4528_v22  ;;  %v4609_v20 = vld [vmem:[#allocation2 + $0x5c0] ss:$16 sps:$4 sm:$0xff]   ;;  %v4617_v22 = vld [vmem:[#allocation2 + $0x5e4] ss:$16 sps:$4 sm:$0xff]  }
  0x95   :  { %1724 = vmatprep.subr.bf16.mxu0 %v4533_v24  ;;  %1888 = vmatprep.subr.bf16.mxu1 %v4536_v25  ;;  %v4620_v24 = vld [vmem:[#allocation2 + $0x5ec] ss:$16 sps:$4 sm:$0xff]   ;;  %v4974_v25 = vrot.slane %v71_v19, %v4947_v49  ;;  %v4627_v49 = vld [vmem:[#allocation2 + $0x620] ss:$16 sps:$4 sm:$0xff]   ;;  %v4701_v19 = vld [vmem:[#allocation2 + $0x7a4] ss:$16 sps:$4 sm:$0xff]  }
  0x96   :  { %1754 = vmatprep.mubr.bf16.mxu0 %v101_v31  ;;  %1918 = vmatprep.mubr.bf16.mxu1 %v101_v31 }
  0x97   :  { %v87_v31 = vcombine.high %v4974_v25, %v4974_v25 }
  0x98   :  { %1725 = vmatpush1.bf16.msra.mxu0 %v4531_v27  ;;  %1889 = vmatpush1.bf16.msra.mxu1 %v4534_v28  ;;  %v4618_v27 = vld [vmem:[#allocation2 + $0x5e8] ss:$16 sps:$4 sm:$0xff]   ;;  %v4623_v28 = vld [vmem:[#allocation2 + $0x604] ss:$16 sps:$4 sm:$0xff]  }
  0x99   :  { %1726 = vmatprep.subr.bf16.mxu0 %v4539_v29  ;;  %1890 = vmatprep.subr.bf16.mxu1 %v4542_v30  ;;  %v4626_v29 = vld [vmem:[#allocation2 + $0x60c] ss:$16 sps:$4 sm:$0xff]   ;;  %v4624_v30 = vld [vmem:[#allocation2 + $0x608] ss:$16 sps:$4 sm:$0xff]  }
  0x9c   :  { %1727 = vmatpush1.bf16.msra.mxu0 %v4537_v32  ;;  %1891 = vmatpush1.bf16.msra.mxu1 %v4540_v33  ;;  %v100_v32 = vpack.c.bf16 %v4967_v26, %v4967_v26  ;;  %v4629_v33 = vld [vmem:[#allocation2 + $0x624] ss:$16 sps:$4 sm:$0xff]  }
  0x9d   :  { %1728 = vmatprep.subr.bf16.mxu0 %v4545_v34  ;;  %1892 = vmatprep.subr.bf16.mxu1 %v4548_v35  ;;  %v4632_v34 = vld [vmem:[#allocation2 + $0x62c] ss:$16 sps:$4 sm:$0xff]   ;;  %v4630_v35 = vld [vmem:[#allocation2 + $0x628] ss:$16 sps:$4 sm:$0xff]   ;;  %v4641_v26 = vld [vmem:[#allocation2 + $0x664] ss:$16 sps:$4 sm:$0xff]  }
  0xa0   :  { %1729 = vmatpush1.bf16.msra.mxu0 %v4543_v36  ;;  %1893 = vmatpush1.bf16.msra.mxu1 %v4546_v37  ;;  %v103_v36 = vpack.c.bf16 %v87_v31, %v87_v31  ;;  %v4635_v37 = vld [vmem:[#allocation2 + $0x644] ss:$16 sps:$4 sm:$0xff]   ;;  %v4714_v31 = vld [vmem:[#allocation2 + $0x7e8] ss:$16 sps:$4 sm:$0xff]  }
  0xa1   :  { %1730 = vmatprep.subr.bf16.mxu0 %v4551_v38  ;;  %1894 = vmatprep.subr.bf16.mxu1 %v4554_v39  ;;  %v4638_v38 = vld [vmem:[#allocation2 + $0x64c] ss:$16 sps:$4 sm:$0xff]   ;;  %v4633_v39 = vld [vmem:[#allocation2 + $0x640] ss:$16 sps:$4 sm:$0xff]  }
  0xa4   :  { %1731 = vmatpush1.bf16.msra.mxu0 %v4549_v40  ;;  %1895 = vmatpush1.bf16.msra.mxu1 %v4552_v41  ;;  %v4636_v40 = vld [vmem:[#allocation2 + $0x648] ss:$16 sps:$4 sm:$0xff]   ;;  %v4644_v41 = vld [vmem:[#allocation2 + $0x66c] ss:$16 sps:$4 sm:$0xff]  }
  0xa5   :  { %1732 = vmatprep.subr.bf16.mxu0 %v4557_v42  ;;  %1896 = vmatprep.subr.bf16.mxu1 %v4560_v44  ;;  %v4639_v42 = vld [vmem:[#allocation2 + $0x660] ss:$16 sps:$4 sm:$0xff]   ;;  %v4642_v44 = vld [vmem:[#allocation2 + $0x668] ss:$16 sps:$4 sm:$0xff]  }
  0xa8   :  { %1733 = vmatpush1.bf16.msra.mxu0 %v4555_v45  ;;  %1897 = vmatpush1.bf16.msra.mxu1 %v4558_v46  ;;  %v4647_v45 = vld [vmem:[#allocation2 + $0x684] ss:$16 sps:$4 sm:$0xff]   ;;  %v4650_v46 = vld [vmem:[#allocation2 + $0x68c] ss:$16 sps:$4 sm:$0xff]  }
  0xa9   :  { %1734 = vmatprep.subr.bf16.mxu0 %v4563_v47  ;;  %1898 = vmatprep.subr.bf16.mxu1 %v4566_v48  ;;  %v4645_v47 = vld [vmem:[#allocation2 + $0x680] ss:$16 sps:$4 sm:$0xff]   ;;  %v4648_v48 = vld [vmem:[#allocation2 + $0x688] ss:$16 sps:$4 sm:$0xff]  }
  0xac   :  { %1735 = vmatpush1.bf16.msra.mxu0 %v4561_v50  ;;  %1899 = vmatpush1.bf16.msra.mxu1 %v4564_v51  ;;  %v4653_v50 = vld [vmem:[#allocation2 + $0x6a4] ss:$16 sps:$4 sm:$0xff]   ;;  %v4656_v51 = vld [vmem:[#allocation2 + $0x6ac] ss:$16 sps:$4 sm:$0xff]  }
  0xad   :  { %1736 = vmatprep.subr.bf16.mxu0 %v4569_v52  ;;  %1900 = vmatprep.subr.bf16.mxu1 %v4572_v53  ;;  %v4651_v52 = vld [vmem:[#allocation2 + $0x6a0] ss:$16 sps:$4 sm:$0xff]   ;;  %v4654_v53 = vld [vmem:[#allocation2 + $0x6a8] ss:$16 sps:$4 sm:$0xff]  }
  0xb0   :  { %1737 = vmatpush1.bf16.msra.mxu0 %v4567_v54  ;;  %1901 = vmatpush1.bf16.msra.mxu1 %v4570_v55  ;;  %v4659_v54 = vld [vmem:[#allocation2 + $0x6c4] ss:$16 sps:$4 sm:$0xff]   ;;  %v4662_v55 = vld [vmem:[#allocation2 + $0x6cc] ss:$16 sps:$4 sm:$0xff]  }
  0xb1   :  { %1738 = vmatprep.subr.bf16.mxu0 %v4575_v56  ;;  %1902 = vmatprep.subr.bf16.mxu1 %v4578_v57  ;;  %v4657_v56 = vld [vmem:[#allocation2 + $0x6c0] ss:$16 sps:$4 sm:$0xff]   ;;  %v4660_v57 = vld [vmem:[#allocation2 + $0x6c8] ss:$16 sps:$4 sm:$0xff]  }
  0xb4   :  { %1739 = vmatpush1.bf16.msra.mxu0 %v4573_v58  ;;  %1903 = vmatpush1.bf16.msra.mxu1 %v4576_v59  ;;  %v4665_v58 = vld [vmem:[#allocation2 + $0x6e4] ss:$16 sps:$4 sm:$0xff]   ;;  %v4668_v59 = vld [vmem:[#allocation2 + $0x6ec] ss:$16 sps:$4 sm:$0xff]  }
  0xb5   :  { %1740 = vmatprep.subr.bf16.mxu0 %v4581_v60  ;;  %1904 = vmatprep.subr.bf16.mxu1 %v4584_v61  ;;  %v4663_v60 = vld [vmem:[#allocation2 + $0x6e0] ss:$16 sps:$4 sm:$0xff]   ;;  %v4666_v61 = vld [vmem:[#allocation2 + $0x6e8] ss:$16 sps:$4 sm:$0xff]  }
  0xb8   :  { %1741 = vmatpush1.bf16.msra.mxu0 %v4579_v62  ;;  %1905 = vmatpush1.bf16.msra.mxu1 %v4582_v63  ;;  %v4671_v62 = vld [vmem:[#allocation2 + $0x704] ss:$16 sps:$4 sm:$0xff]   ;;  %v4674_v63 = vld [vmem:[#allocation2 + $0x70c] ss:$16 sps:$4 sm:$0xff]  }
  0xb9   :  { %1742 = vmatprep.subr.bf16.mxu0 %v4587_v0  ;;  %1906 = vmatprep.subr.bf16.mxu1 %v4590_v1  ;;  %v4669_v0 = vld [vmem:[#allocation2 + $0x700] ss:$16 sps:$4 sm:$0xff]   ;;  %v4672_v1 = vld [vmem:[#allocation2 + $0x708] ss:$16 sps:$4 sm:$0xff]  }
  0xbc   :  { %1743 = vmatpush1.bf16.msra.mxu0 %v4585_v2  ;;  %1907 = vmatpush1.bf16.msra.mxu1 %v4588_v3  ;;  %v4677_v2 = vld [vmem:[#allocation2 + $0x724] ss:$16 sps:$4 sm:$0xff]   ;;  %v4680_v3 = vld [vmem:[#allocation2 + $0x72c] ss:$16 sps:$4 sm:$0xff]  }
  0xbd   :  { %1744 = vmatprep.subr.bf16.mxu0 %v4593_v4  ;;  %1908 = vmatprep.subr.bf16.mxu1 %v4596_v5  ;;  %v4675_v4 = vld [vmem:[#allocation2 + $0x720] ss:$16 sps:$4 sm:$0xff]   ;;  %v4678_v5 = vld [vmem:[#allocation2 + $0x728] ss:$16 sps:$4 sm:$0xff]  }
  0xc0   :  { %1745 = vmatpush1.bf16.msra.mxu0 %v4591_v6  ;;  %1909 = vmatpush1.bf16.msra.mxu1 %v4594_v7  ;;  %v4683_v6 = vld [vmem:[#allocation2 + $0x744] ss:$16 sps:$4 sm:$0xff]   ;;  %v4686_v7 = vld [vmem:[#allocation2 + $0x74c] ss:$16 sps:$4 sm:$0xff]  }
  0xc1   :  { %1746 = vmatprep.subr.bf16.mxu0 %v4599_v8  ;;  %1910 = vmatprep.subr.bf16.mxu1 %v4602_v10  ;;  %v4681_v8 = vld [vmem:[#allocation2 + $0x740] ss:$16 sps:$4 sm:$0xff]   ;;  %v4684_v10 = vld [vmem:[#allocation2 + $0x748] ss:$16 sps:$4 sm:$0xff]  }
  0xc4   :  { %1747 = vmatpush1.bf16.msra.mxu0 %v4597_v11  ;;  %1911 = vmatpush1.bf16.msra.mxu1 %v4600_v12  ;;  %v4689_v11 = vld [vmem:[#allocation2 + $0x764] ss:$16 sps:$4 sm:$0xff]   ;;  %v4692_v12 = vld [vmem:[#allocation2 + $0x76c] ss:$16 sps:$4 sm:$0xff]  }
  0xc5   :  { %1748 = vmatprep.subr.bf16.mxu0 %v4605_v13  ;;  %1912 = vmatprep.subr.bf16.mxu1 %v4608_v14  ;;  %v4687_v13 = vld [vmem:[#allocation2 + $0x760] ss:$16 sps:$4 sm:$0xff]   ;;  %v4690_v14 = vld [vmem:[#allocation2 + $0x768] ss:$16 sps:$4 sm:$0xff]  }
  0xc8   :  { %1749 = vmatpush1.bf16.msra.mxu0 %v4603_v15  ;;  %1913 = vmatpush1.bf16.msra.mxu1 %v4606_v16  ;;  %v4695_v15 = vld [vmem:[#allocation2 + $0x784] ss:$16 sps:$4 sm:$0xff]   ;;  %v4698_v16 = vld [vmem:[#allocation2 + $0x78c] ss:$16 sps:$4 sm:$0xff]  }
  0xc9   :  { %1750 = vmatprep.subr.bf16.mxu0 %v4611_v17  ;;  %1914 = vmatprep.subr.bf16.mxu1 %v4614_v18  ;;  %v4693_v17 = vld [vmem:[#allocation2 + $0x780] ss:$16 sps:$4 sm:$0xff]   ;;  %v4696_v18 = vld [vmem:[#allocation2 + $0x788] ss:$16 sps:$4 sm:$0xff]  }
  0xcc   :  { %1751 = vmatpush1.bf16.msra.mxu0 %v4609_v20  ;;  %1915 = vmatpush1.bf16.msra.mxu1 %v4612_v21  ;;  %v4704_v20 = vld [vmem:[#allocation2 + $0x7ac] ss:$16 sps:$4 sm:$0xff]   ;;  %v4699_v21 = vld [vmem:[#allocation2 + $0x7a0] ss:$16 sps:$4 sm:$0xff]  }
  0xcd   :  { %1752 = vmatprep.subr.bf16.mxu0 %v4617_v22  ;;  %1916 = vmatprep.subr.bf16.mxu1 %v4620_v24  ;;  %v4702_v22 = vld [vmem:[#allocation2 + $0x7a8] ss:$16 sps:$4 sm:$0xff]   ;;  %v4707_v24 = vld [vmem:[#allocation2 + $0x7c4] ss:$16 sps:$4 sm:$0xff]  }
  0xd0   :  { %1753 = vmatpush1.bf16.msra.mxu0 %v4615_v9  ;;  %1917 = vmatpush1.bf16.msra.mxu1 %v4618_v27  ;;  %v4710_v9 = vld [vmem:[#allocation2 + $0x7cc] ss:$16 sps:$4 sm:$0xff]   ;;  %v4705_v27 = vld [vmem:[#allocation2 + $0x7c0] ss:$16 sps:$4 sm:$0xff]  }
  0xd1   :  { %1763 = vmatprep.subr.bf16.mxu0 %v4623_v28  ;;  %1927 = vmatprep.subr.bf16.mxu1 %v4626_v29  ;;  %v4708_v28 = vld [vmem:[#allocation2 + $0x7c8] ss:$16 sps:$4 sm:$0xff]   ;;  %v4713_v29 = vld [vmem:[#allocation2 + $0x7e4] ss:$16 sps:$4 sm:$0xff]  }
  0xd3   :  { %1755 = vmatmul.mubr.bf16.vlgmr.msra.gmra.mrb[0].mxu0 %v100_v32  ;;  %1919 = vmatmul.mubr.bf16.vlgmr.msra.gmra.mrb[0].mxu1 %v100_v32  ;;  %v4720_v32 = vld [vmem:[%s5557_s2 + $0x4] ss:$8 sps:$4 sm:$0xff]  }
  0xd4   :  { %1764 = vmatpush1.bf16.msra.mxu0 %v4621_v23  ;;  %1928 = vmatpush1.bf16.msra.mxu1 %v4624_v30  ;;  %v4716_v23 = vld [vmem:[#allocation2 + $0x7ec] ss:$16 sps:$4 sm:$0xff]   ;;  %v4711_v30 = vld [vmem:[#allocation2 + $0x7e0] ss:$16 sps:$4 sm:$0xff]  }
  0xd5   :  { %1765 = vmatprep.subr.bf16.mxu0 %v4629_v33  ;;  %1929 = vmatprep.subr.bf16.mxu1 %v4632_v34  ;;  %v102_v33 = vpack.c.bf16 %v4974_v25, %v4974_v25  ;;  %v4718_v34 = vld [vmem:[%s5557_s2] ss:$8 sps:$4 sm:$0xff]   ;;  %v4726_v25 = vld [vmem:[%s5557_s2 + $0x24] ss:$8 sps:$4 sm:$0xff]  }
  0xd6   :  { %1795 = vmatprep.mubr.bf16.mxu0 %v103_v36  ;;  %1959 = vmatprep.mubr.bf16.mxu1 %v103_v36  ;;  %v4724_v36 = vld [vmem:[%s5557_s2 + $0x20] ss:$8 sps:$4 sm:$0xff]  }
  0xd8   :  { %1766 = vmatpush1.bf16.msra.mxu0 %v4627_v49  ;;  %1930 = vmatpush1.bf16.msra.mxu1 %v4630_v35  ;;  %v4723_v49 = vld [vmem:[%s5557_s2 + $0x14] ss:$8 sps:$4 sm:$0xff]   ;;  %v4721_v35 = vld [vmem:[%s5557_s2 + $0x10] ss:$8 sps:$4 sm:$0xff]  }
  0xd9   :  { %1767 = vmatprep.subr.bf16.mxu0 %v4635_v37  ;;  %1931 = vmatprep.subr.bf16.mxu1 %v4638_v38  ;;  %v4729_v37 = vld [vmem:[%s5557_s2 + $0x34] ss:$8 sps:$4 sm:$0xff]   ;;  %v4727_v38 = vld [vmem:[%s5557_s2 + $0x30] ss:$8 sps:$4 sm:$0xff]  }
  0xdc   :  { %1768 = vmatpush1.bf16.msra.mxu0 %v4633_v39  ;;  %1932 = vmatpush1.bf16.msra.mxu1 %v4636_v40  ;;  %v4732_v39 = vld [vmem:[%s5557_s2 + $0x44] ss:$8 sps:$4 sm:$0xff]   ;;  %v4730_v40 = vld [vmem:[%s5557_s2 + $0x40] ss:$8 sps:$4 sm:$0xff]  }
  0xdd   :  { %1769 = vmatprep.subr.bf16.mxu0 %v4641_v26  ;;  %1933 = vmatprep.subr.bf16.mxu1 %v4644_v41  ;;  %v4735_v26 = vld [vmem:[%s5557_s2 + $0x54] ss:$8 sps:$4 sm:$0xff]   ;;  %v4733_v41 = vld [vmem:[%s5557_s2 + $0x50] ss:$8 sps:$4 sm:$0xff]  }
  0xe0   :  { %1770 = vmatpush1.bf16.msra.mxu0 %v4639_v42  ;;  %1934 = vmatpush1.bf16.msra.mxu1 %v4642_v44  ;;  %v4738_v42 = vld [vmem:[%s5557_s2 + $0x64] ss:$8 sps:$4 sm:$0xff]   ;;  %v4736_v44 = vld [vmem:[%s5557_s2 + $0x60] ss:$8 sps:$4 sm:$0xff]  }
  0xe1   :  { %1771 = vmatprep.subr.bf16.mxu0 %v4647_v45  ;;  %1935 = vmatprep.subr.bf16.mxu1 %v4650_v46  ;;  %v4741_v45 = vld [vmem:[%s5557_s2 + $0x74] ss:$8 sps:$4 sm:$0xff]   ;;  %v4739_v46 = vld [vmem:[%s5557_s2 + $0x70] ss:$8 sps:$4 sm:$0xff]  }
  0xe4   :  { %1772 = vmatpush1.bf16.msra.mxu0 %v4645_v47  ;;  %1936 = vmatpush1.bf16.msra.mxu1 %v4648_v48  ;;  %v4744_v47 = vld [vmem:[%s5557_s2 + $0x84] ss:$8 sps:$4 sm:$0xff]   ;;  %v4742_v48 = vld [vmem:[%s5557_s2 + $0x80] ss:$8 sps:$4 sm:$0xff]  }
  0xe5   :  { %1773 = vmatprep.subr.bf16.mxu0 %v4653_v50  ;;  %1937 = vmatprep.subr.bf16.mxu1 %v4656_v51  ;;  %v4747_v50 = vld [vmem:[%s5557_s2 + $0x94] ss:$8 sps:$4 sm:$0xff]   ;;  %v4745_v51 = vld [vmem:[%s5557_s2 + $0x90] ss:$8 sps:$4 sm:$0xff]  }
  0xe8   :  { %1774 = vmatpush1.bf16.msra.mxu0 %v4651_v52  ;;  %1938 = vmatpush1.bf16.msra.mxu1 %v4654_v53  ;;  %v4750_v52 = vld [vmem:[%s5557_s2 + $0xa4] ss:$8 sps:$4 sm:$0xff]   ;;  %v4748_v53 = vld [vmem:[%s5557_s2 + $0xa0] ss:$8 sps:$4 sm:$0xff]  }
  0xe9   :  { %1775 = vmatprep.subr.bf16.mxu0 %v4659_v54  ;;  %1939 = vmatprep.subr.bf16.mxu1 %v4662_v55  ;;  %v4753_v54 = vld [vmem:[%s5557_s2 + $0xb4] ss:$8 sps:$4 sm:$0xff]   ;;  %v4751_v55 = vld [vmem:[%s5557_s2 + $0xb0] ss:$8 sps:$4 sm:$0xff]  }
  0xec   :  { %1776 = vmatpush1.bf16.msra.mxu0 %v4657_v56  ;;  %1940 = vmatpush1.bf16.msra.mxu1 %v4660_v57  ;;  %v4756_v56 = vld [vmem:[%s5557_s2 + $0xc4] ss:$8 sps:$4 sm:$0xff]   ;;  %v4754_v57 = vld [vmem:[%s5557_s2 + $0xc0] ss:$8 sps:$4 sm:$0xff]  }
  0xed   :  { %1777 = vmatprep.subr.bf16.mxu0 %v4665_v58  ;;  %1941 = vmatprep.subr.bf16.mxu1 %v4668_v59  ;;  %v4759_v58 = vld [vmem:[%s5557_s2 + $0xd4] ss:$8 sps:$4 sm:$0xff]   ;;  %v4757_v59 = vld [vmem:[%s5557_s2 + $0xd0] ss:$8 sps:$4 sm:$0xff]  }
  0xf0   :  { %1778 = vmatpush1.bf16.msra.mxu0 %v4663_v60  ;;  %1942 = vmatpush1.bf16.msra.mxu1 %v4666_v61  ;;  %v4762_v60 = vld [vmem:[%s5557_s2 + $0xe4] ss:$8 sps:$4 sm:$0xff]   ;;  %v4760_v61 = vld [vmem:[%s5557_s2 + $0xe0] ss:$8 sps:$4 sm:$0xff]  }
  0xf1   :  { %1779 = vmatprep.subr.bf16.mxu0 %v4671_v62  ;;  %1943 = vmatprep.subr.bf16.mxu1 %v4674_v63  ;;  %v4765_v62 = vld [vmem:[%s5557_s2 + $0xf4] ss:$8 sps:$4 sm:$0xff]   ;;  %v4763_v63 = vld [vmem:[%s5557_s2 + $0xf0] ss:$8 sps:$4 sm:$0xff]  }
  0xf4   :  { %1780 = vmatpush1.bf16.msra.mxu0 %v4669_v0  ;;  %1944 = vmatpush1.bf16.msra.mxu1 %v4672_v1  ;;  %v4768_v0 = vld [vmem:[%s5557_s2 + $0x104] ss:$8 sps:$4 sm:$0xff]  }
  0xf5   :  { %1781 = vmatprep.subr.bf16.mxu0 %v4677_v2  ;;  %1945 = vmatprep.subr.bf16.mxu1 %v4680_v3  ;;  %v2493_v1 = vld [vmem:[%s5561_s6 + $0x80] sm:$0xff]  ;;  %v2494_v2 = vld [vmem:[%s5561_s6 + $0x88] sm:$0xff] }
  0xf6   :  { %v2477_v3 = vld [vmem:[%s5561_s6] sm:$0xff] }
  0xf8   :  { %1782 = vmatpush1.bf16.msra.mxu0 %v4675_v4  ;;  %1946 = vmatpush1.bf16.msra.mxu1 %v4678_v5  ;;  %v5090_v4 = vpack.c.bf16 %v2494_v2, %v2493_v1  ;;  %v2478_v5 = vld [vmem:[%s5561_s6 + $0x8] sm:$0xff] }
  0xf9   :  { %1783 = vmatprep.subr.bf16.mxu0 %v4683_v6  ;;  %1947 = vmatprep.subr.bf16.mxu1 %v4686_v7  ;;  %v2495_v6 = vld [vmem:[%s5561_s6 + $0x90] sm:$0xff]  ;;  %v2496_v7 = vld [vmem:[%s5561_s6 + $0x98] sm:$0xff]  ;;  %v4798_v1 = vld [vmem:[%s5557_s2 + $0x1a4] ss:$8 sps:$4 sm:$0xff]  }
  0xfa   :  { %v4796_v2 = vld [vmem:[%s5557_s2 + $0x1a0] ss:$8 sps:$4 sm:$0xff]  }
  0xfc   :  { %1784 = vmatpush1.bf16.msra.mxu0 %v4681_v8  ;;  %1948 = vmatpush1.bf16.msra.mxu1 %v4684_v10  ;;  %v5101_v8 = vpack.c.bf16 %v2478_v5, %v2477_v3  ;;  %v5103_v10 = vpack.c.bf16 %v2496_v7, %v2495_v6  ;;  %v4801_v3 = vld [vmem:[%s5557_s2 + $0x1b4] ss:$8 sps:$4 sm:$0xff]   ;;  %v4799_v5 = vld [vmem:[%s5557_s2 + $0x1b0] ss:$8 sps:$4 sm:$0xff]   ;;  %v4804_v6 = vld [vmem:[%s5557_s2 + $0x1c4] ss:$8 sps:$4 sm:$0xff]  }
  0xfd   :  { %1785 = vmatprep.subr.bf16.mxu0 %v4689_v11  ;;  %1949 = vmatprep.subr.bf16.mxu1 %v4692_v12  ;;  %v2479_v11 = vld [vmem:[%s5561_s6 + $0x10] sm:$0xff]  ;;  %v2480_v12 = vld [vmem:[%s5561_s6 + $0x18] sm:$0xff]  ;;  %v4802_v7 = vld [vmem:[%s5557_s2 + $0x1c0] ss:$8 sps:$4 sm:$0xff]  }
 0x100   :  { %1786 = vmatpush1.bf16.msra.mxu0 %v4687_v13  ;;  %1950 = vmatpush1.bf16.msra.mxu1 %v4690_v14  ;;  %v2497_v13 = vld [vmem:[%s5561_s6 + $0xa0] sm:$0xff]  ;;  %v2498_v14 = vld [vmem:[%s5561_s6 + $0xa8] sm:$0xff] }
 0x101   :  { %1787 = vmatprep.subr.bf16.mxu0 %v4695_v15  ;;  %1951 = vmatprep.subr.bf16.mxu1 %v4698_v16  ;;  %v5119_v15 = vpack.c.bf16 %v2480_v12, %v2479_v11  ;;  %v5122_v16 = vpack.c.bf16 %v2498_v14, %v2497_v13  ;;  %v4807_v11 = vld [vmem:[%s5557_s2 + $0x1d4] ss:$8 sps:$4 sm:$0xff]   ;;  %v4805_v12 = vld [vmem:[%s5557_s2 + $0x1d0] ss:$8 sps:$4 sm:$0xff]   ;;  %v4810_v13 = vld [vmem:[%s5557_s2 + $0x1e4] ss:$8 sps:$4 sm:$0xff]  }
 0x102   :  { %v4808_v14 = vld [vmem:[%s5557_s2 + $0x1e0] ss:$8 sps:$4 sm:$0xff]  }
 0x104   :  { %1788 = vmatpush1.bf16.msra.mxu0 %v4693_v17  ;;  %1952 = vmatpush1.bf16.msra.mxu1 %v4696_v18  ;;  %v2481_v17 = vld [vmem:[%s5561_s6 + $0x20] sm:$0xff]  ;;  %v2482_v18 = vld [vmem:[%s5561_s6 + $0x28] sm:$0xff] }
 0x105   :  { %1789 = vmatprep.subr.bf16.mxu0 %v4701_v19  ;;  %1953 = vmatprep.subr.bf16.mxu1 %v4704_v20  ;;  %v2499_v19 = vld [vmem:[%s5561_s6 + $0xb0] sm:$0xff]  ;;  %v2500_v20 = vld [vmem:[%s5561_s6 + $0xb8] sm:$0xff] }
 0x108   :  { %1790 = vmatpush1.bf16.msra.mxu0 %v4699_v21  ;;  %1954 = vmatpush1.bf16.msra.mxu1 %v4702_v22  ;;  %v5137_v21 = vpack.c.bf16 %v2482_v18, %v2481_v17  ;;  %v5140_v22 = vpack.c.bf16 %v2500_v20, %v2499_v19  ;;  %v4813_v18 = vld [vmem:[%s5557_s2 + $0x1f4] ss:$8 sps:$4 sm:$0xff]   ;;  %v4811_v19 = vld [vmem:[%s5557_s2 + $0x1f0] ss:$8 sps:$4 sm:$0xff]  }
 0x109   :  { %1791 = vmatprep.subr.bf16.mxu0 %v4707_v24  ;;  %1955 = vmatprep.subr.bf16.mxu1 %v4710_v9  ;;  %v2483_v24 = vld [vmem:[%s5561_s6 + $0x30] sm:$0xff]  ;;  %v2484_v9 = vld [vmem:[%s5561_s6 + $0x38] sm:$0xff] }
 0x10c   :  { %1792 = vmatpush1.bf16.msra.mxu0 %v4705_v27  ;;  %1956 = vmatpush1.bf16.msra.mxu1 %v4708_v28  ;;  %v2501_v27 = vld [vmem:[%s5561_s6 + $0xc0] sm:$0xff]  ;;  %v2502_v28 = vld [vmem:[%s5561_s6 + $0xc8] sm:$0xff] }
 0x10d   :  { %1793 = vmatprep.subr.bf16.mxu0 %v4713_v29  ;;  %1957 = vmatprep.subr.bf16.mxu1 %v4716_v23  ;;  %v5155_v29 = vpack.c.bf16 %v2484_v9, %v2483_v24  ;;  %v5158_v23 = vpack.c.bf16 %v2502_v28, %v2501_v27  ;;  %v2485_v9 = vld [vmem:[%s5561_s6 + $0x40] sm:$0xff]  ;;  %v2486_v27 = vld [vmem:[%s5561_s6 + $0x48] sm:$0xff] }
 0x10e   :  { %v5265_v28 = vpack.c.bf16 %v2486_v27, %v2485_v9 }
 0x110   :  { %1794 = vmatpush1.bf16.msra.mxu0 %v4711_v30  ;;  %1958 = vmatpush1.bf16.msra.mxu1 %v4714_v31 }
 0x111   :  { %2364 = vmatprep.subr.bf16.mxu0 %v4720_v32  ;;  %4166 = vmatprep.subr.bf16.mxu1 %v5090_v4 }
 0x113   :  { %1796 = vmatmul.mubr.bf16.vlgmr.msra.gmra.mrb[0].mxu0 %v102_v33  ;;  %1960 = vmatmul.mubr.bf16.vlgmr.msra.gmra.mrb[0].mxu1 %v102_v33 }
 0x114   :  { %2365 = vmatpush1.bf16.msra.mxu0 %v4718_v34  ;;  %4168 = vmatpush3.bf16.msra.mxu1 %v5101_v8 }
 0x115   :  { %2366 = vmatprep.subr.bf16.mxu0 %v4723_v49  ;;  %4170 = vmatprep.subr.bf16.mxu1 %v5103_v10 }
 0x118   :  { %2367 = vmatpush1.bf16.msra.mxu0 %v4721_v35  ;;  %4172 = vmatpush3.bf16.msra.mxu1 %v5119_v15 }
 0x119   :  { %2368 = vmatprep.subr.bf16.mxu0 %v4726_v25  ;;  %4174 = vmatprep.subr.bf16.mxu1 %v5122_v16 }
 0x11c   :  { %2369 = vmatpush1.bf16.msra.mxu0 %v4724_v36  ;;  %4176 = vmatpush3.bf16.msra.mxu1 %v5137_v21 }
 0x11d   :  { %2370 = vmatprep.subr.bf16.mxu0 %v4729_v37  ;;  %4178 = vmatprep.subr.bf16.mxu1 %v5140_v22 }
 0x120   :  { %2371 = vmatpush1.bf16.msra.mxu0 %v4727_v38  ;;  %4180 = vmatpush3.bf16.msra.mxu1 %v5155_v29 }
 0x121   :  { %2372 = vmatprep.subr.bf16.mxu0 %v4732_v39  ;;  %4182 = vmatprep.subr.bf16.mxu1 %v5158_v23 }
 0x124   :  { %2373 = vmatpush1.bf16.msra.mxu0 %v4730_v40  ;;  %4184 = vmatpush3.bf16.msra.mxu1 %v5265_v28 }
 0x125   :  { %2374 = vmatprep.subr.bf16.mxu0 %v4735_v26 }
 0x128   :  { %2375 = vmatpush1.bf16.msra.mxu0 %v4733_v41 }
 0x129   :  { %2376 = vmatprep.subr.bf16.mxu0 %v4738_v42  ;;  %v4766_v42 = vld [vmem:[%s5557_s2 + $0x100] ss:$8 sps:$4 sm:$0xff]  }
 0x12c   :  { %2377 = vmatpush1.bf16.msra.mxu0 %v4736_v44 }
 0x12d   :  { %2378 = vmatprep.subr.bf16.mxu0 %v4741_v45  ;;  %v4771_v45 = vld [vmem:[%s5557_s2 + $0x114] ss:$8 sps:$4 sm:$0xff]  }
 0x130   :  { %2379 = vmatpush1.bf16.msra.mxu0 %v4739_v46 }
 0x131   :  { %2380 = vmatprep.subr.bf16.mxu0 %v4744_v47  ;;  %v4769_v47 = vld [vmem:[%s5557_s2 + $0x110] ss:$8 sps:$4 sm:$0xff]  }
 0x134   :  { %2381 = vmatpush1.bf16.msra.mxu0 %v4742_v48  ;;  %v4774_v48 = vld [vmem:[%s5557_s2 + $0x124] ss:$8 sps:$4 sm:$0xff]  }
 0x135   :  { %2382 = vmatprep.subr.bf16.mxu0 %v4747_v50  ;;  %v4772_v50 = vld [vmem:[%s5557_s2 + $0x120] ss:$8 sps:$4 sm:$0xff]  }
 0x138   :  { %2383 = vmatpush1.bf16.msra.mxu0 %v4745_v51  ;;  %v4777_v51 = vld [vmem:[%s5557_s2 + $0x134] ss:$8 sps:$4 sm:$0xff]  }
 0x139   :  { %2384 = vmatprep.subr.bf16.mxu0 %v4750_v52  ;;  %v4775_v52 = vld [vmem:[%s5557_s2 + $0x130] ss:$8 sps:$4 sm:$0xff]  }
 0x13c   :  { %2385 = vmatpush1.bf16.msra.mxu0 %v4748_v53  ;;  %v4780_v53 = vld [vmem:[%s5557_s2 + $0x144] ss:$8 sps:$4 sm:$0xff]  }
 0x13d   :  { %2386 = vmatprep.subr.bf16.mxu0 %v4753_v54  ;;  %v4778_v54 = vld [vmem:[%s5557_s2 + $0x140] ss:$8 sps:$4 sm:$0xff]  }
 0x140   :  { %2387 = vmatpush1.bf16.msra.mxu0 %v4751_v55  ;;  %v4783_v55 = vld [vmem:[%s5557_s2 + $0x154] ss:$8 sps:$4 sm:$0xff]  }
 0x141   :  { %2388 = vmatprep.subr.bf16.mxu0 %v4756_v56  ;;  %v4781_v56 = vld [vmem:[%s5557_s2 + $0x150] ss:$8 sps:$4 sm:$0xff]  }
 0x144   :  { %2389 = vmatpush1.bf16.msra.mxu0 %v4754_v57  ;;  %v4786_v57 = vld [vmem:[%s5557_s2 + $0x164] ss:$8 sps:$4 sm:$0xff]  }
 0x145   :  { %2390 = vmatprep.subr.bf16.mxu0 %v4759_v58  ;;  %v4784_v58 = vld [vmem:[%s5557_s2 + $0x160] ss:$8 sps:$4 sm:$0xff]  }
 0x148   :  { %2391 = vmatpush1.bf16.msra.mxu0 %v4757_v59  ;;  %v4789_v59 = vld [vmem:[%s5557_s2 + $0x174] ss:$8 sps:$4 sm:$0xff]  }
 0x149   :  { %2392 = vmatprep.subr.bf16.mxu0 %v4762_v60  ;;  %v4787_v60 = vld [vmem:[%s5557_s2 + $0x170] ss:$8 sps:$4 sm:$0xff]  }
 0x14c   :  { %2393 = vmatpush1.bf16.msra.mxu0 %v4760_v61  ;;  %v4792_v61 = vld [vmem:[%s5557_s2 + $0x184] ss:$8 sps:$4 sm:$0xff]  }
 0x14d   :  { %2394 = vmatprep.subr.bf16.mxu0 %v4765_v62  ;;  %v4790_v62 = vld [vmem:[%s5557_s2 + $0x180] ss:$8 sps:$4 sm:$0xff]  }
 0x150   :  { %2395 = vmatpush1.bf16.msra.mxu0 %v4763_v63  ;;  %v4795_v63 = vld [vmem:[%s5557_s2 + $0x194] ss:$8 sps:$4 sm:$0xff]  }
 0x151   :  { %2405 = vmatprep.subr.bf16.mxu0 %v4768_v0  ;;  %v4793_v0 = vld [vmem:[%s5557_s2 + $0x190] ss:$8 sps:$4 sm:$0xff]  }
 0x1e6   :  { %v1797_v30 = vpop.f32.mrb[0].mxu0  ;;  %v5162_v31 = vpop.f32.mrb[0].mxu1 }
 0x1e7   :  { %v1968_v32 = vmul.f32 0.2, %v1797_v30  ;;  %v1799_v33 = vpop.f32.mrb[1].mxu0  ;;  %v1963_v34 = vpop.f32.mrb[1].mxu1  ;;  %v1970_v17 = vmul.f32 0.2, %v5162_v31 }
 0x1e8   :  { %v1969_v49 = vmul.f32 0.2, %v1799_v33  ;;  %v1971_v35 = vmul.f32 0.2, %v1963_v34  ;;  %v1801_v25 = vpop.f32.mrb[2].mxu0  ;;  %v1965_v36 = vpop.f32.mrb[2].mxu1 }
 0x1e9   :  { %v1972_v37 = vmax.f32 %v1797_v30, %v1968_v32  ;;  %v1802_v38 = vpop.f32.mrb[3].mxu0  ;;  %v1966_v39 = vpop.f32.mrb[3].mxu1  ;;  %v1974_v20 = vmax.f32 %v5162_v31, %v1970_v17  ;;  %v2503_v30 = vld [vmem:[%s5561_s6 + $0xd0] sm:$0xff]  ;;  %v2504_v31 = vld [vmem:[%s5561_s6 + $0xd8] sm:$0xff]  ;;  %v2506_v25 = vld [vmem:[%s5561_s6 + $0xe8] sm:$0xff] }
 0x1ea   :  { %v1973_v40 = vmax.f32 %v1799_v33, %v1969_v49  ;;  %v1975_v26 = vmax.f32 %v1963_v34, %v1971_v35  ;;  %v5274_v32 = vpack.c.bf16 %v2504_v31, %v2503_v30  ;;  %v2487_v33 = vld [vmem:[%s5561_s6 + $0x50] sm:$0xff]  ;;  %v2488_v34 = vld [vmem:[%s5561_s6 + $0x58] sm:$0xff]  ;;  %v2505_v35 = vld [vmem:[%s5561_s6 + $0xe0] sm:$0xff] }
 0x1eb   :  { %v1976_v44 = vpack.c.bf16 %v1972_v37, %v1972_v37  ;;  %v1978_v24 = vpack.c.bf16 %v1974_v20, %v1974_v20  ;;  %v5282_v49 = vpack.c.bf16 %v2488_v34, %v2487_v33  ;;  %v4189_v36 = vpack.c.bf16 %v2506_v25, %v2505_v35  ;;  %v2489_v37 = vld [vmem:[%s5561_s6 + $0x60] sm:$0xff]  ;;  %v2490_v38 = vld [vmem:[%s5561_s6 + $0x68] sm:$0xff] }
 0x1ec   :  { %v1977_v41 = vpack.c.bf16 %v1973_v40, %v1973_v40  ;;  %v1979_v46 = vpack.c.bf16 %v1975_v26, %v1975_v26  ;;  %4186 = vmatprep.subr.bf16.mxu1 %v5274_v32  ;;  %v4191_v39 = vpack.c.bf16 %v2490_v38, %v2489_v37  ;;  %v2507_v40 = vld [vmem:[%s5561_s6 + $0xf0] sm:$0xff]  ;;  %v2508_v26 = vld [vmem:[%s5561_s6 + $0xf8] sm:$0xff]  ;;  %v2657_v17 = vld [vmem:[%s5562_s7] sm:$0xff]  ;;  %v4874_v20 = vmov 0.0  }
 0x1ed   :  { %4188 = vmatpush3.bf16.msra.mxu1 %v5282_v49  ;;  %v4814_v37 = vld [vmem:[%s5558_s3 + $0x40] sm:$0xff]  }
 0x1ee   :  { %2396 = vmatprep.mubr.bf16.mxu0 %v1977_v41  ;;  %4190 = vmatprep.subr.bf16.mxu1 %v4189_v36  ;;  %v4193_v41 = vpack.c.bf16 %v2508_v26, %v2507_v40  ;;  %v4815_v38 = vld [vmem:[%s5558_s3] sm:$0xff]   ;;  %v4817_v40 = vld [vmem:[%s5558_s3 + $0x8] sm:$0xff]   ;;  %v4818_v26 = vld [vmem:[%s5558_s3 + $0x50] sm:$0xff]  }
 0x1ef   :  { %2397 = vmatmul.mubr.bf16.vlgmr.msra.gmra.mrb[4].mxu0 %v1976_v44  ;;  %v2492_v44 = vld [vmem:[%s5561_s6 + $0x78] sm:$0xff] }
 0x1f0   :  { %2406 = vmatpush1.bf16.msra.mxu0 %v4766_v42  ;;  %2437 = vmatprep.mubr.bf16.mxu0 %v1979_v46  ;;  %v2491_v42 = vld [vmem:[%s5561_s6 + $0x70] sm:$0xff] }
 0x1f1   :  { %2407 = vmatprep.subr.bf16.mxu0 %v4771_v45  ;;  %4192 = vmatpush3.bf16.msra.mxu1 %v4191_v39  ;;  %v4195_v45 = vpack.c.bf16 %v2492_v44, %v2491_v42  ;;  %v4820_v42 = vld [vmem:[%s5558_s3 + $0x58] sm:$0xff]  }
 0x1f2   :  { %4194 = vmatprep.subr.bf16.mxu1 %v4193_v41  ;;  %v4821_v44 = vld [vmem:[%s5558_s3 + $0x18] sm:$0xff]  }
 0x1f4   :  { %2408 = vmatpush1.bf16.msra.mxu0 %v4769_v47 }
 0x1f5   :  { %2409 = vmatprep.subr.bf16.mxu0 %v4774_v48  ;;  %4196 = vmatpush3.bf16.msra.mxu1 %v4195_v45 }
 0x1f6   :  { %4198 = vmatprep.subr.bf16.mxu1 %v5090_v4 }
 0x1f8   :  { %2410 = vmatpush1.bf16.msra.mxu0 %v4772_v50 }
 0x1f9   :  { %2411 = vmatprep.subr.bf16.mxu0 %v4777_v51 }
 0x1fc   :  { %2412 = vmatpush1.bf16.msra.mxu0 %v4775_v52 }
 0x1fd   :  { %2413 = vmatprep.subr.bf16.mxu0 %v4780_v53 }
 0x200   :  { %2414 = vmatpush1.bf16.msra.mxu0 %v4778_v54 }
 0x201   :  { %2415 = vmatprep.subr.bf16.mxu0 %v4783_v55 }
 0x204   :  { %2416 = vmatpush1.bf16.msra.mxu0 %v4781_v56 }
 0x205   :  { %2417 = vmatprep.subr.bf16.mxu0 %v4786_v57 }
 0x208   :  { %2418 = vmatpush1.bf16.msra.mxu0 %v4784_v58 }
 0x209   :  { %2419 = vmatprep.subr.bf16.mxu0 %v4789_v59 }
 0x20c   :  { %2420 = vmatpush1.bf16.msra.mxu0 %v4787_v60 }
 0x20d   :  { %2421 = vmatprep.subr.bf16.mxu0 %v4792_v61 }
 0x210   :  { %2422 = vmatpush1.bf16.msra.mxu0 %v4790_v62 }
 0x211   :  { %2423 = vmatprep.subr.bf16.mxu0 %v4795_v63 }
 0x214   :  { %2424 = vmatpush1.bf16.msra.mxu0 %v4793_v0 }
 0x215   :  { %2425 = vmatprep.subr.bf16.mxu0 %v4798_v1 }
 0x218   :  { %2426 = vmatpush1.bf16.msra.mxu0 %v4796_v2 }
 0x219   :  { %2427 = vmatprep.subr.bf16.mxu0 %v4801_v3 }
 0x21c   :  { %2428 = vmatpush1.bf16.msra.mxu0 %v4799_v5 }
 0x21d   :  { %2429 = vmatprep.subr.bf16.mxu0 %v4804_v6 }
 0x220   :  { %2430 = vmatpush1.bf16.msra.mxu0 %v4802_v7 }
 0x221   :  { %2431 = vmatprep.subr.bf16.mxu0 %v4807_v11 }
 0x224   :  { %2432 = vmatpush1.bf16.msra.mxu0 %v4805_v12 }
 0x225   :  { %2433 = vmatprep.subr.bf16.mxu0 %v4810_v13 }
 0x228   :  { %2434 = vmatpush1.bf16.msra.mxu0 %v4808_v14 }
 0x229   :  { %2435 = vmatprep.subr.bf16.mxu0 %v4813_v18  ;;  %v2659_v18 = vld [vmem:[%s5562_s7 + $0x10] sm:$0xff] }
 0x22c   :  { %2436 = vmatpush1.bf16.msra.mxu0 %v4811_v19  ;;  %v4231_v19 = vpack.c.bf16 %v2659_v18, %v2657_v17 }
 0x22f   :  { %2438 = vmatmul.mubr.bf16.vlgmr.msra.gmra.mrb[4].mxu0 %v1978_v24 }
 0x230   :  { %4112 = vmatprep.mubr.msk.f32.mxu0 %vm4876_vm2, %v4874_v20 }
 0x302   :  { %v5311_v46 = vpop.f32.mrb[4].mxu0 }
 0x303   :  { %v2447_v47 = vsel %vm2446_vm0, %v5311_v46, 0.0  ;;  %v5315_v48 = vpop.f32.mrb[5].mxu0  ;;  %v2461_v12 = vmul.f32 %v5311_v46, %v5311_v46 }
 0x304   :  { %v2448_v50 = vrot.slane %v2447_v47, 4  ;;  %v2454_v51 = vsel %vm2446_vm0, %v5315_v48, 0.0  ;;  %v2462_v52 = vmul.f32 %v5315_v48, %v5315_v48  ;;  %v2443_v53 = vpop.f32.mrb[6].mxu0 }
 0x305   :  { %v2455_v54 = vrot.slane %v2454_v51, 4  ;;  %v2444_v55 = vpop.f32.mrb[7].mxu0  ;;  %v2463_v13 = vsel %vm2446_vm0, %v2461_v12, 0.0  ;;  %v4827_v53 = vld [vmem:[%s5558_s3 + $0x30] sm:$0xff]  }
 0x306   :  { %v2449_v56 = vadd.f32 %v2448_v50, %v2447_v47  ;;  %v2470_v4 = vsel %vm2446_vm0, %v2462_v52, 0.0  ;;  %v2464_v14 = vrot.slane %v2463_v13, 4  ;;  %v4823_v47 = vld [vmem:[%s5558_s3 + $0x20] sm:$0xff]   ;;  %v4824_v50 = vld [vmem:[%s5558_s3 + $0x68] sm:$0xff]   ;;  %v4826_v52 = vld [vmem:[%s5558_s3 + $0x70] sm:$0xff]  }
 0x307   :  { %v2456_v57 = vadd.f32 %v2455_v54, %v2454_v51  ;;  %v2471_v58 = vrot.slane %v2470_v4, 4  ;;  %v4825_v51 = vld [vmem:[%s5558_s3 + $0x28] sm:$0xff]   ;;  %v4828_v54 = vld [vmem:[%s5558_s3 + $0x78] sm:$0xff]  }
 0x308   :  { %v2450_v59 = vrot.slane %v2449_v56, 2  ;;  %v4829_v55 = vld [vmem:[%s5558_s3 + $0x38] sm:$0xff]  }
 0x309   :  { %v2457_v60 = vrot.slane %v2456_v57, 2  ;;  %v2472_v61 = vadd.f32 %v2471_v58, %v2470_v4  ;;  %v3020_v4 = vld [vmem:[%s5563_s8 + $0x8] sm:$0xff] }
 0x30a   :  { %v2451_v62 = vadd.f32 %v2450_v59, %v2449_v56  ;;  %v3019_v56 = vld [vmem:[%s5563_s8] sm:$0xff]  ;;  %v3021_v59 = vld [vmem:[%s5563_s8 + $0x10] sm:$0xff] }
 0x30b   :  { %v2458_v63 = vadd.f32 %v2457_v60, %v2456_v57  ;;  %v2473_v0 = vrot.slane %v2472_v61, 2  ;;  %v4875_v57 = vmov 0.0|0.0   ;;  %v4238_v58 = vpack.c.bf16 %v3020_v4, %v3019_v56  ;;  %v3022_v60 = vld [vmem:[%s5563_s8 + $0x18] sm:$0xff] }
 0x30c   :  { %v2452_v1 = vrot.slane %v2451_v62, 1  ;;  %4261 = vmatprep.subr.bf16.mxu0 %v4875_v57 }
 0x30d   :  { %v2459_v2 = vrot.slane %v2458_v63, 1  ;;  %v2474_v3 = vadd.f32 %v2473_v0, %v2472_v61  ;;  %4263 = vmatpush3.bf16.msra.mxu0 %v4238_v58  ;;  %v4241_v61 = vpack.c.bf16 %v3022_v60, %v3021_v59  ;;  %v3185_v60 = vld [vmem:[%s5564_s9 + $0x10] sm:$0xff] }
 0x30e   :  { %v2453_v7 = vadd.f32 %v2452_v1, %v2451_v62  ;;  %4264 = vmatprep.subr.bf16.mxu0 %v4875_v57  ;;  %v3023_v62 = vld [vmem:[%s5563_s8 + $0x20] sm:$0xff]  ;;  %v3025_v1 = vld [vmem:[%s5563_s8 + $0x30] sm:$0xff] }
 0x30f   :  { %v2460_v5 = vadd.f32 %v2459_v2, %v2458_v63  ;;  %v2475_v6 = vrot.slane %v2474_v3, 1  ;;  %v3024_v63 = vld [vmem:[%s5563_s8 + $0x28] sm:$0xff]  ;;  %v3026_v2 = vld [vmem:[%s5563_s8 + $0x38] sm:$0xff] }
 0x310   :  { %v4244_v0 = vpack.c.bf16 %v3024_v63, %v3023_v62 }
 0x311   :  { %2573 = vmatprep.mubr.f32.mxu1 %v2460_v5  ;;  %v2476_v11 = vadd.f32 %v2475_v6, %v2474_v3  ;;  %4266 = vmatpush3.bf16.msra.mxu0 %v4241_v61  ;;  %v4247_v3 = vpack.c.bf16 %v3026_v2, %v3025_v1  ;;  %v5429_v5 = vsub.s32 0, %v4944_v43 }
 0x312   :  { %2574 = vmatmul.mubr.f32.vlgmr.msra.gmra.mrb[4].mxu1 %v2453_v7  ;;  %4267 = vmatprep.subr.bf16.mxu0 %v4875_v57 }
 0x313   :  { %4200 = vmatpush3.bf16.msra.mxu1 %v5101_v8  ;;  %2643 = vmatprep.mubr.f32.mxu1 %v2476_v11  ;;  %v2465_v8 = vadd.f32 %v2464_v14, %v2463_v13 }
 0x314   :  { %4202 = vmatprep.subr.bf16.mxu1 %v5103_v10 }
 0x315   :  { %v2466_v10 = vrot.slane %v2465_v8, 2  ;;  %4269 = vmatpush3.bf16.msra.mxu0 %v4244_v0 }
 0x316   :  { %4270 = vmatprep.subr.bf16.mxu0 %v4875_v57 }
 0x317   :  { %4204 = vmatpush3.bf16.msra.mxu1 %v5119_v15  ;;  %v2467_v15 = vadd.f32 %v2466_v10, %v2465_v8 }
 0x318   :  { %4206 = vmatprep.subr.bf16.mxu1 %v5122_v16 }
 0x319   :  { %v2468_v16 = vrot.slane %v2467_v15, 1  ;;  %4272 = vmatpush3.bf16.msra.mxu0 %v4247_v3 }
 0x31a   :  { %4273 = vmatprep.subr.bf16.mxu0 %v4875_v57 }
 0x31b   :  { %4208 = vmatpush3.bf16.msra.mxu1 %v5137_v21  ;;  %v2469_v21 = vadd.f32 %v2468_v16, %v2467_v15 }
 0x31c   :  { %4210 = vmatprep.subr.bf16.mxu1 %v5140_v22  ;;  %v2658_v22 = vld [vmem:[%s5562_s7 + $0x8] sm:$0xff] }
 0x31f   :  { %4212 = vmatpush3.bf16.msra.mxu1 %v5155_v29  ;;  %v2660_v29 = vld [vmem:[%s5562_s7 + $0x18] sm:$0xff] }
 0x320   :  { %4214 = vmatprep.subr.bf16.mxu1 %v5158_v23  ;;  %v4229_v23 = vpack.c.bf16 %v2660_v29, %v2658_v22 }
 0x323   :  { %4216 = vmatpush3.bf16.msra.mxu1 %v5265_v28 }
 0x324   :  { %4218 = vmatprep.subr.bf16.mxu1 %v5274_v32 }
 0x327   :  { %4220 = vmatpush3.bf16.msra.mxu1 %v5282_v49 }
 0x328   :  { %4222 = vmatprep.subr.bf16.mxu1 %v4189_v36 }
 0x32b   :  { %4224 = vmatpush3.bf16.msra.mxu1 %v4191_v39  ;;  %v4816_v39 = vld [vmem:[%s5558_s3 + $0x48] sm:$0xff]  }
 0x32c   :  { %4226 = vmatprep.subr.bf16.mxu1 %v4193_v41  ;;  %v4819_v41 = vld [vmem:[%s5558_s3 + $0x10] sm:$0xff]  }
 0x32f   :  { %4228 = vmatpush3.bf16.msra.mxu1 %v4195_v45  ;;  %v4822_v45 = vld [vmem:[%s5558_s3 + $0x60] sm:$0xff]  }
 0x330   :  { %4230 = vmatprep.subr.bf16.mxu1 %v4229_v23 }
 0x332   :  { %2644 = vmatmul.mubr.f32.vlgmr.msra.gmra.mrb[6].mxu1 %v2469_v21 }
 0x333   :  { %4232 = vmatpush1.bf16.msra.mxu1 %v4231_v19  ;;  %2729 = vmatprep.mubr.f32.mxu1 %v4874_v20 }
 0x334   :  { %4234 = vmatprep.subr.bf16.mxu1 %v4229_v23 }
 0x3e5   :  { %v3929_v24 = vpop.f32.mrb[4].mxu1 }
 0x3e6   :  { %v3930_v9 = vpop.f32.mrb[5].mxu1 }
 0x3e7   :  { %v3931_v27 = vadd.f32 %v3930_v9, %v3929_v24  ;;  %v3029_v9 = vld [vmem:[%s5563_s8 + $0x50] sm:$0xff] }
 0x3e9   :  { %v2650_v28 = vmul.f32 0.03125, %v3931_v27  ;;  %v3030_v27 = vld [vmem:[%s5563_s8 + $0x58] sm:$0xff] }
 0x3eb   :  { %3866 = vmatmul.mubr.msk.f32.vlgmr.msra.gmra.mrb[8].mxu1 %vm2661_vm1, %v2650_v28  ;;  %v2652_v33 = vmul.f32 %v2650_v28, %v2650_v28  ;;  %v4253_v28 = vpack.c.bf16 %v3030_v27, %v3029_v9 }
 0x3ec   :  { %4236 = vmatpush1.bf16.msra.mxu1 %v4231_v19  ;;  %2803 = vmatprep.mubr.f32.mxu1 %v4874_v20 }
 0x3ed   :  { %3967 = vmatprep.subr.bf16.mxu1 %v4814_v37 }
 0x405   :  { %v3964_v30 = vpop.f32.mrb[6].mxu1 }
 0x406   :  { %v3965_v31 = vpop.f32.mrb[7].mxu1 }
 0x407   :  { %v3966_v32 = vadd.f32 %v3965_v31, %v3964_v30  ;;  %v3031_v30 = vld [vmem:[%s5563_s8 + $0x60] sm:$0xff]  ;;  %v3032_v31 = vld [vmem:[%s5563_s8 + $0x68] sm:$0xff] }
 0x409   :  { %v2651_v34 = vmul.f32 0.03125, %v3966_v32  ;;  %v4256_v32 = vpack.c.bf16 %v3032_v31, %v3031_v30  ;;  %v4838_v30 = vld [vmem:[%s5560_s5] sm:$0xff]   ;;  %v4839_v31 = vld [vmem:[%s5560_s5 + $0x8] sm:$0xff]  }
 0x40b   :  { %v2653_v49 = vsub.f32 %v2651_v34, %v2652_v33  ;;  %v3033_v33 = vld [vmem:[%s5563_s8 + $0x70] sm:$0xff]  ;;  %v3034_v34 = vld [vmem:[%s5563_s8 + $0x78] sm:$0xff] }
 0x40d   :  { %v2654_v35 = vmax.f32 %v2653_v49, 0.0  ;;  %v4259_v49 = vpack.c.bf16 %v3034_v34, %v3033_v33 }
 0x40f   :  { %v2655_v25 = vadd.f32 1e-05, %v2654_v35 }
 0x411   :  { %4840 = vrsqrt.f32 %v2655_v25 }
 0x41b   :  { %v4841_v36 = vpop.eup %4840 }
 0x41c   :  { %3867 = vmatmul.mubr.msk.f32.vlgmr.msra.gmra.mrb[10].mxu1 %vm2661_vm1, %v4841_v36 }
 0x41d   :  { %3968 = vmatpush3.bf16.msra.mxu1 %v4815_v38 }
 0x41e   :  { %3969 = vmatprep.subr.bf16.mxu1 %v4816_v39 }
 0x421   :  { %3970 = vmatpush3.bf16.msra.mxu1 %v4817_v40 }
 0x422   :  { %3971 = vmatprep.subr.bf16.mxu1 %v4818_v26 }
 0x425   :  { %3972 = vmatpush3.bf16.msra.mxu1 %v4819_v41 }
 0x426   :  { %3973 = vmatprep.subr.bf16.mxu1 %v4820_v42 }
 0x429   :  { %3974 = vmatpush3.bf16.msra.mxu1 %v4821_v44 }
 0x42a   :  { %3975 = vmatprep.subr.bf16.mxu1 %v4822_v45 }
 0x42d   :  { %3976 = vmatpush3.bf16.msra.mxu1 %v4823_v47 }
 0x42e   :  { %3977 = vmatprep.subr.bf16.mxu1 %v4824_v50 }
 0x431   :  { %3978 = vmatpush3.bf16.msra.mxu1 %v4825_v51 }
 0x432   :  { %3979 = vmatprep.subr.bf16.mxu1 %v4826_v52 }
 0x435   :  { %3980 = vmatpush3.bf16.msra.mxu1 %v4827_v53 }
 0x436   :  { %3981 = vmatprep.subr.bf16.mxu1 %v4828_v54  ;;  %v3183_v54 = vld [vmem:[%s5564_s9] sm:$0xff] }
 0x439   :  { %3982 = vmatpush3.bf16.msra.mxu1 %v4829_v55  ;;  %v3184_v55 = vld [vmem:[%s5564_s9 + $0x8] sm:$0xff] }
 0x43a   :  { %4237 = vmatprep.subr.bf16.mxu1 %v4875_v57 }
 0x4be   :  { %v2731_v6 = vpop.f32.mrb[8].mxu1 }
 0x4bf   :  { %v2813_v7 = vrot.slane %v2731_v6, %v5429_v5  ;;  %v2733_v11 = vpop.f32.mrb[9].mxu1 }
 0x4c0   :  { %v2817_v12 = vrot.slane %v2733_v11, %v5429_v5 }
 0x4c1   :  { %v2818_v13 = vsub.f32 %v5311_v46, %v2813_v7  ;;  %v3027_v46 = vld [vmem:[%s5563_s8 + $0x40] sm:$0xff] }
 0x4c2   :  { %v2819_v14 = vsub.f32 %v5315_v48, %v2817_v12  ;;  %v3028_v48 = vld [vmem:[%s5563_s8 + $0x48] sm:$0xff] }
 0x4c3   :  { %v4250_v24 = vpack.c.bf16 %v3028_v48, %v3027_v46 }
 0x4c5   :  { %4275 = vmatpush3.bf16.msra.mxu0 %v4250_v24 }
 0x4c6   :  { %4276 = vmatprep.subr.bf16.mxu0 %v4875_v57 }
 0x4c9   :  { %4278 = vmatpush3.bf16.msra.mxu0 %v4253_v28 }
 0x4ca   :  { %4279 = vmatprep.subr.bf16.mxu0 %v4875_v57 }
 0x4cd   :  { %4281 = vmatpush3.bf16.msra.mxu0 %v4256_v32 }
 0x4ce   :  { %4282 = vmatprep.subr.bf16.mxu0 %v4875_v57 }
 0x4d1   :  { %4284 = vmatpush3.bf16.msra.mxu0 %v4259_v49 }
 0x4d2   :  { %4285 = vmatprep.subr.bf16.mxu0 %v4875_v57 }
 0x4ef   :  { %v2805_v8 = vpop.f32.mrb[10].mxu1 }
 0x4f0   :  { %v2823_v10 = vrot.slane %v2805_v8, %v5429_v5  ;;  %v2807_v15 = vpop.f32.mrb[11].mxu1  ;;  %v4831_v8 = vld [vmem:[%s5559_s4 + $0x8] sm:$0xff]  }
 0x4f1   :  { %v2827_v16 = vrot.slane %v2807_v15, %v5429_v5  ;;  %v4833_v15 = vld [vmem:[%s5559_s4 + $0x18] sm:$0xff]  }
 0x4f2   :  { %v2828_v21 = vmul.f32 %v2823_v10, %v2818_v13  ;;  %v4830_v13 = vld [vmem:[%s5559_s4] sm:$0xff]   ;;  %v4832_v10 = vld [vmem:[%s5559_s4 + $0x10] sm:$0xff]  }
 0x4f3   :  { %v2829_v22 = vmul.f32 %v2827_v16, %v2819_v14  ;;  %v4834_v16 = vld [vmem:[%s5559_s4 + $0x20] sm:$0xff]  }
 0x4f4   :  { %v2830_v43 = vmul.f32 0.2, %v2828_v21 }
 0x4f5   :  { %v2831_v29 = vmul.f32 0.2, %v2829_v22 }
 0x4f6   :  { %v2832_v23 = vmax.f32 %v2828_v21, %v2830_v43  ;;  %v4835_v21 = vld [vmem:[%s5559_s4 + $0x28] sm:$0xff]   ;;  %v4837_v43 = vld [vmem:[%s5559_s4 + $0x38] sm:$0xff]  }
 0x4f7   :  { %v2833_v17 = vmax.f32 %v2829_v22, %v2831_v29  ;;  %v4836_v22 = vld [vmem:[%s5559_s4 + $0x30] sm:$0xff]  }
 0x4f8   :  { %v2834_v19 = vpack.c.bf16 %v2832_v23, %v2832_v23 }
 0x4f9   :  { %v2835_v18 = vpack.c.bf16 %v2833_v17, %v2833_v17 }
 0x4fb   :  { %2996 = vmatprep.mubr.bf16.mxu1 %v2835_v18 }
 0x4fc   :  { %2997 = vmatmul.mubr.bf16.vlgmr.msra.gmra.mrb[12].mxu1 %v2834_v19 }
 0x4fd   :  { %4239 = vmatpush3.bf16.msra.mxu1 %v4238_v58  ;;  %4077 = vmatprep.mubr.msk.f32.mxu1 %vm4876_vm2, %v4874_v20  ;;  %v4286_v58 = vpack.c.bf16 %v3184_v55, %v3183_v54 }
 0x4fe   :  { %4240 = vmatprep.subr.bf16.mxu1 %v4875_v57 }
 0x501   :  { %4242 = vmatpush3.bf16.msra.mxu1 %v4241_v61  ;;  %v3186_v61 = vld [vmem:[%s5564_s9 + $0x18] sm:$0xff] }
 0x502   :  { %4243 = vmatprep.subr.bf16.mxu1 %v4875_v57  ;;  %v4289_v62 = vpack.c.bf16 %v3186_v61, %v3185_v60 }
 0x505   :  { %4245 = vmatpush3.bf16.msra.mxu1 %v4244_v0 }
 0x506   :  { %4246 = vmatprep.subr.bf16.mxu1 %v4875_v57 }
 0x509   :  { %4248 = vmatpush3.bf16.msra.mxu1 %v4247_v3 }
 0x50a   :  { %4249 = vmatprep.subr.bf16.mxu1 %v4875_v57 }
 0x50d   :  { %4251 = vmatpush3.bf16.msra.mxu1 %v4250_v24 }
 0x50e   :  { %4252 = vmatprep.subr.bf16.mxu1 %v4875_v57 }
 0x511   :  { %4254 = vmatpush3.bf16.msra.mxu1 %v4253_v28 }
 0x512   :  { %4255 = vmatprep.subr.bf16.mxu1 %v4875_v57 }
 0x515   :  { %4257 = vmatpush3.bf16.msra.mxu1 %v4256_v32 }
 0x516   :  { %4258 = vmatprep.subr.bf16.mxu1 %v4875_v57 }
 0x519   :  { %4260 = vmatpush3.bf16.msra.mxu1 %v4259_v49 }
 0x51a   :  { %4291 = vmatprep.subr.bf16.mxu1 %v4875_v57 }
 0x5cf   :  { %v3983_v35 = vpop.f32.mrb[12].mxu1 }
 0x5d0   :  { %v3984_v25 = vpop.f32.mrb[13].mxu1 }
 0x5d1   :  { %v5477_v36 = vadd.f32 %v3984_v25, %v3983_v35  ;;  %v3986_v37 = vpop.f32.mrb[14].mxu1 }
 0x5d2   :  { %v3987_v38 = vpop.f32.mrb[15].mxu1 }
 0x5d3   :  { %v3004_v39 = vsel %vm2446_vm0, %v5477_v36, 0.0  ;;  %v3011_v40 = vmul.f32 %v5477_v36, %v5477_v36 }
 0x5d4   :  { %v3005_v26 = vrot.slane %v3004_v39, 4 }
 0x5d5   :  { %v3012_v41 = vsel %vm2446_vm0, %v3011_v40, 0.0 }
 0x5d6   :  { %v3006_v42 = vadd.f32 %v3005_v26, %v3004_v39  ;;  %v3013_v44 = vrot.slane %v3012_v41, 4 }
 0x5d8   :  { %v3007_v45 = vrot.slane %v3006_v42, 2  ;;  %v3014_v47 = vadd.f32 %v3013_v44, %v3012_v41 }
 0x5da   :  { %v3008_v50 = vadd.f32 %v3007_v45, %v3006_v42  ;;  %v3015_v51 = vrot.slane %v3014_v47, 2 }
 0x5dc   :  { %v3009_v52 = vrot.slane %v3008_v50, 1  ;;  %v3016_v53 = vadd.f32 %v3015_v51, %v3014_v47 }
 0x5de   :  { %v3010_v56 = vadd.f32 %v3009_v52, %v3008_v50  ;;  %v3017_v4 = vrot.slane %v3016_v53, 1 }
 0x5e0   :  { %4078 = vmatmul.mubr.f32.vlgmr.msra.gmra.mrb[16].mxu1 %v3010_v56  ;;  %v3018_v59 = vadd.f32 %v3017_v4, %v3016_v53 }
 0x5e1   :  { %4293 = vmatpush3.bf16.msra.mxu1 %v4286_v58  ;;  %4134 = vmatprep.mubr.msk.f32.mxu1 %vm4876_vm2, %v4874_v20 }
 0x5e2   :  { %4113 = vmatmul.mubr.f32.vlgmr.msra.gmra.mrb[8].mxu0 %v3018_v59  ;;  %4294 = vmatprep.subr.bf16.mxu1 %v4875_v57 }
 0x5e3   :  { %4287 = vmatpush3.bf16.msra.mxu0 %v4286_v58  ;;  %4123 = vmatprep.mubr.msk.f32.mxu0 %vm4876_vm2, %v4874_v20 }
 0x5e4   :  { %4288 = vmatprep.subr.bf16.mxu0 %v4875_v57 }
 0x5e5   :  { %4296 = vmatpush3.bf16.msra.mxu1 %v4289_v62 }
 0x5e6   :  { %4137 = vmatprep.subr.bf16.mxu1 %v4874_v20 }
 0x5e7   :  { %4290 = vmatpush3.bf16.msra.mxu0 %v4289_v62 }
 0x5e8   :  { %4157 = vmatprep.subr.bf16.mxu0 %v4874_v20 }
 0x6b3   :  { %v3101_v63 = vpop.f32.mrb[16].mxu1 }
 0x6b4   :  { %v3176_v0 = vmul.f32 0.125, %v3101_v63  ;;  %v4079_v1 = vpop.f32.mrb[17].mxu1 }
 0x6b5   :  { %v3171_v57 = vpop.f32.mrb[8].mxu0 }
 0x6b6   :  { %v3178_v2 = vmul.f32 %v3176_v0, %v3176_v0  ;;  %v3177_v3 = vmul.f32 0.125, %v3171_v57  ;;  %v4114_v6 = vpop.f32.mrb[9].mxu0  ;;  %4124 = vmatmul.mubr.msk.f32.vlgmr.msra.gmra.mrb[10].mxu0 %vm3187_vm3, %v3176_v0 }
 0x6b7   :  { %4161 = vmatprep.mubr.msk.bf16.mxu0 %vm4876_vm2, %v4874_v20  ;;  %4158 = vmatpush3.bf16.msra.mxu0 %v4838_v30 }
 0x6b8   :  { %v3179_v7 = vsub.f32 %v3177_v3, %v3178_v2  ;;  %4159 = vmatprep.subr.bf16.mxu0 %v4874_v20 }
 0x6ba   :  { %v3180_v11 = vmax.f32 %v3179_v7, 0.0 }
 0x6bb   :  { %4160 = vmatpush3.bf16.msra.mxu0 %v4839_v31 }
 0x6bc   :  { %v3181_v12 = vadd.f32 1e-05, %v3180_v11 }
 0x6be   :  { %4842 = vrsqrt.f32 %v3181_v12 }
 0x6c8   :  { %v4843_v14 = vpop.eup %4842 }
 0x6c9   :  { %4135 = vmatmul.mubr.msk.f32.vlgmr.msra.gmra.mrb[18].mxu1 %vm3187_vm3, %v4843_v14 }
 0x6ca   :  { %4138 = vmatpush3.bf16.msra.mxu1 %v4830_v13  ;;  %4153 = vmatprep.mubr.msk.bf16.mxu1 %vm4876_vm2, %v4874_v20 }
 0x6cb   :  { %4139 = vmatprep.subr.bf16.mxu1 %v4874_v20 }
 0x6ce   :  { %4140 = vmatpush3.bf16.msra.mxu1 %v4831_v8 }
 0x6cf   :  { %4141 = vmatprep.subr.bf16.mxu1 %v4874_v20 }
 0x6d2   :  { %4142 = vmatpush3.bf16.msra.mxu1 %v4832_v10 }
 0x6d3   :  { %4143 = vmatprep.subr.bf16.mxu1 %v4874_v20 }
 0x6d6   :  { %4144 = vmatpush3.bf16.msra.mxu1 %v4833_v15 }
 0x6d7   :  { %4145 = vmatprep.subr.bf16.mxu1 %v4874_v20 }
 0x6da   :  { %4146 = vmatpush3.bf16.msra.mxu1 %v4834_v16 }
 0x6db   :  { %4147 = vmatprep.subr.bf16.mxu1 %v4874_v20 }
 0x6de   :  { %4148 = vmatpush3.bf16.msra.mxu1 %v4835_v21 }
 0x6df   :  { %4149 = vmatprep.subr.bf16.mxu1 %v4874_v20 }
 0x6e2   :  { %4150 = vmatpush3.bf16.msra.mxu1 %v4836_v22 }
 0x6e3   :  { %4151 = vmatprep.subr.bf16.mxu1 %v4874_v20 }
 0x6e6   :  { %4152 = vmatpush3.bf16.msra.mxu1 %v4837_v43 }
 0x789   :  { %v3257_v29 = vpop.f32.mrb[10].mxu0 }
 0x78a   :  { %v4125_v23 = vpop.f32.mrb[11].mxu0  ;;  %v3337_v17 = vrot.slane %v3257_v29, %v5429_v5 }
 0x78c   :  { %v3338_v19 = vsub.f32 %v5477_v36, %v3337_v17 }
 0x79c   :  { %v3330_v18 = vpop.f32.mrb[18].mxu1 }
 0x79d   :  { %v3342_v46 = vrot.slane %v3330_v18, %v5429_v5  ;;  %v4136_v48 = vpop.f32.mrb[19].mxu1 }
 0x79f   :  { %v3343_v24 = vmul.f32 %v3342_v46, %v3338_v19 }
 0x7a1   :  { %v3344_v9 = vmul.f32 0.2, %v3343_v24 }
 0x7a3   :  { %v3345_v27 = vmax.f32 %v3343_v24, %v3344_v9 }
 0x7a5   :  { %v3346_v28 = vpack.c.bf16 %v3345_v27, %v3345_v27 }
 0x7a7   :  { %4154 = vmatmul.mubr.bf16.vlgmr.msra.gmra.mrb[20].mxu1 %v3346_v28 }
 0x87a   :  { %v3445_v5 = vpop.f32.mrb[20].mxu1 }
 0x87b   :  { %v3452_v32 = vsel %vm3451_vm4, %v3445_v5, 0.0  ;;  %v3461_v33 = vmul.f32 %v3445_v5, %v3445_v5  ;;  %v4155_v34 = vpop.f32.mrb[21].mxu1 }
 0x87c   :  { %v3453_v49 = vrot.slane %v3452_v32, 4  ;;  %v3448_v35 = vpop.f32.mrb[22].mxu1 }
 0x87d   :  { %v3462_v25 = vsel %vm3451_vm4, %v3461_v33, 0.0  ;;  %v4156_v36 = vpop.f32.mrb[23].mxu1 }
 0x87e   :  { %v3454_v37 = vadd.f32 %v3453_v49, %v3452_v32  ;;  %v3463_v38 = vrot.slane %v3462_v25, 4 }
 0x880   :  { %v3455_v39 = vrot.slane %v3454_v37, 2  ;;  %v3464_v40 = vadd.f32 %v3463_v38, %v3462_v25 }
 0x882   :  { %v3456_v26 = vadd.f32 %v3455_v39, %v3454_v37  ;;  %v3465_v20 = vrot.slane %v3464_v40, 2 }
 0x884   :  { %v3457_v41 = vrot.slane %v3456_v26, 1  ;;  %v3466_v42 = vadd.f32 %v3465_v20, %v3464_v40 }
 0x886   :  { %v3458_v44 = vadd.f32 %v3457_v41, %v3456_v26  ;;  %v3467_v45 = vrot.slane %v3466_v42, 1 }
 0x888   :  { %v3460_v47 = vmul.f32 0.5, %v3458_v44  ;;  %v3468_v50 = vadd.f32 %v3467_v45, %v3466_v42 }
 0x88a   :  { %v3469_v51 = vmul.f32 0.5, %v3468_v50  ;;  %v3470_v52 = vmul.f32 %v3460_v47, %v3460_v47  ;;  %v3473_v56 = vsub.f32 %v3445_v5, %v3460_v47 }
 0x88c   :  { %v3471_v53 = vsub.f32 %v3469_v51, %v3470_v52 }
 0x88e   :  { %v3472_v54 = vmax.f32 %v3471_v53, 0.0 }
 0x890   :  { %v3474_v55 = vadd.f32 1e-05, %v3472_v54 }
 0x892   :  { %4844 = vrsqrt.f32 %v3474_v55 }
 0x89c   :  { %v4845_v4 = vpop.eup %4844 }
 0x89d   :  { %v3476_v58 = vmul.f32 %v4845_v4, %v3473_v56 }
 0x89f   :  { %v3477_v59 = vmul.f32 0.2, %v3476_v58 }
 0x8a1   :  { %v3478_v60 = vmax.f32 %v3476_v58, %v3477_v59 }
 0x8a3   :  { %v3479_v61 = vpack.c.bf16 %v3478_v60, %v3478_v60 }
 0x8a5   :  { %4162 = vmatmul.mubr.msk.bf16.vlgmr.msra.gmra.mrb[12].mxu0 %vm3187_vm3, %v3479_v61 }
 0x978   :  { %v3533_v62 = vpop.f32.mrb[12].mxu0 }
 0x979   :  { %3540 = vst.msk [vmem:[%s5565_s10] sm:$0x3] %vm3539_vm5, %v3533_v62  ;;  %v4163_v63 = vpop.f32.mrb[13].mxu0 }
 0x97a   :  { %v3536_v0 = vpop.f32.mrb[14].mxu0 }
 0x97b   :  { %v4164_v1 = vpop.f32.mrb[15].mxu0 }
 0x97c   :  { %3545 = vsyncpa [#allocation3], 1 }

</bundles_post_ra>
